<compile_context>
chip_gen: v6e
topology: v6e:2x2x1
jax: 0.10.0
libtpu: 0.0.40
codegen_flags: <defaults>
</compile_context>

<pallas_src>
import functools

import jax
import jax.numpy as jnp
import numpy as np
from jax import lax
from jax.experimental import pallas as pl
from jax.experimental.pallas import tpu as pltpu


# ----------------------------------------------------------------------------
# Whole-model kernel: one grid step per batch element, all layers in-kernel.
# ----------------------------------------------------------------------------
def _mha_kernel(x_ref, wqkv_ref, bqkv_ref, wo_ref, bo_ref, gamma_ref, beta_ref,
                lmw_ref, lmb_ref, o_ref, *, seq, emb_dim, num_heads, num_layers):
    """Full forward for ONE batch element (grid axis 0 = batch, 'parallel').

    Kernel-view shapes (activations transposed, feature dim on sublanes):
      x_ref:    (D, T)            wqkv_ref: (L, 3D, D)   bqkv_ref: (L, 3D, 1)
      wo_ref:   (L, D, D)  (pre-transposed in wrapper: y_t = wo_ref[l] @ h_t)
      bo/gamma/beta: (L, D, 1)    lmw_ref: (D, Vpad)     lmb_ref: (1, Vpad)
      o_ref:    (T, Vpad)
    """
    T, D, H, L = seq, emb_dim, num_heads, num_layers
    Dh = D // H

    # Causal mask with the 1/sqrt(D) scale baked in. torch does
    # tril -> divide -> softmax, and tril zeros stay zero after the divide,
    # so (raw_att * tril * scale) is exactly equivalent. Computed once.
    row = lax.broadcasted_iota(jnp.int32, (T, T), 0)
    col = lax.broadcasted_iota(jnp.int32, (T, T), 1)
    mask_scaled = (col <= row).astype(jnp.float32) * (
        1.0 / jnp.sqrt(jnp.float32(D)))          # sqrt(embedding_dim), NOT sqrt(Dh)

    x_t = x_ref[...]                                            # (D, T), f32

    for l in range(L):                                          # static unroll
        # Fused QKV projection (transposed): (3D, D) @ (D, T) -> (3D, T).
        qkvt = jnp.dot(wqkv_ref[l], x_t,
                       preferred_element_type=jnp.float32) + bqkv_ref[l]

        # Rows are ordered [Q heads | K heads | V heads], head-concatenated;
        # Dh == 8 rows == one sublane tile, so this reshape is a pure
        # re-tiling (no data movement).
        qkvh = qkvt.reshape(3, H, Dh, T)
        # (H, T, Dh) views via batched minor-dims swap (leading batch dim).
        q = jnp.transpose(qkvh[0], (0, 2, 1))
        k = jnp.transpose(qkvh[1], (0, 2, 1))
        v = jnp.transpose(qkvh[2], (0, 2, 1))

        # Attention batched over all heads: two dot_generals total.
        att = jnp.einsum('hqd,hkd->hqk', q, k,
                         preferred_element_type=jnp.float32)    # (H, T, T)
        att = att * mask_scaled                                 # tril + /sqrt(D)
        # Scores are bounded (zeroed above diagonal, scaled); exp cannot
        # overflow, so skip the per-row max subtraction (saves an XLU reduce).
        e = jnp.exp(att)
        probs = e * pl.reciprocal(jnp.sum(e, axis=-1, keepdims=True))  # exact
        out = jnp.einsum('hqk,hkd->hqd', probs, v,
                         preferred_element_type=jnp.float32)    # (H, T, Dh)

        # Merge heads back to (D, T); again a layout-preserving reshape.
        hidden_t = jnp.transpose(out, (0, 2, 1)).reshape(D, T)

        # Output projection + residual, all in registers (no VMEM scratch).
        y_t = jnp.dot(wo_ref[l], hidden_t,
                      preferred_element_type=jnp.float32) + bo_ref[l] + x_t

        # LayerNorm over the feature (sublane) axis; eps=1e-5, biased var.
        mean = jnp.mean(y_t, axis=0, keepdims=True)
        var = jnp.mean(jnp.square(y_t - mean), axis=0, keepdims=True)
        x_t = (y_t - mean) * lax.rsqrt(var + 1e-5) * gamma_ref[l] + beta_ref[l]

    # lm_head: one tiny 2D transpose of the activations, then a lane-dense
    # (T, Vpad) store (Vpad is a multiple of 128).
    logits = jnp.dot(jnp.transpose(x_t), lmw_ref[...],
                     preferred_element_type=jnp.float32) + lmb_ref[...]
    o_ref[...] = logits


# ----------------------------------------------------------------------------
# Wrapper
# ----------------------------------------------------------------------------
def mha_forward(token_idxs, params, num_heads):
    """MHA.forward (logits only; label=None path)."""
    wte, wpe, (w_qkv, b_qkv, w_o, b_o, gamma, beta), lm_w, lm_b = params
    B, T = token_idxs.shape
    D = wte.shape[1]
    L = w_qkv.shape[0]
    V = lm_w.shape[1]
    Vpad = pl.cdiv(V, 128) * 128

    # Glue (embedding gathers, layout prep, vocab padding) stays in plain JAX.
    x = wte[token_idxs] + wpe[:T][None, :, :]                  # (B, T, D)
    x_t = jnp.transpose(x, (0, 2, 1))                          # (B, D, T)
    wqkv_t = jnp.transpose(w_qkv, (0, 2, 1))                   # (L, 3D, D)
    bqkv_t = jnp.transpose(b_qkv, (0, 2, 1))                   # (L, 3D, 1)
    wo_t = jnp.transpose(w_o, (0, 2, 1))                       # (L, D, D)
    bo_t = jnp.transpose(b_o, (0, 2, 1))                       # (L, D, 1)
    gamma_t = jnp.transpose(gamma, (0, 2, 1))                  # (L, D, 1)
    beta_t = jnp.transpose(beta, (0, 2, 1))                    # (L, D, 1)
    lm_w_p = jnp.pad(lm_w, ((0, 0), (0, Vpad - V)))            # (D, Vpad)
    lm_b_p = jnp.pad(lm_b, ((0, 0), (0, Vpad - V)))            # (1, Vpad)

    kernel = functools.partial(_mha_kernel, seq=T, emb_dim=D,
                               num_heads=num_heads, num_layers=L)
    out = pl.pallas_call(
        kernel,
        out_shape=jax.ShapeDtypeStruct((B, T, Vpad), jnp.float32),
        grid=(B,),
        in_specs=[
            pl.BlockSpec((None, D, T), lambda b: (b, 0, 0)),       # x_t[b]
            pl.BlockSpec((L, 3 * D, D), lambda b: (0, 0, 0)),      # all-layer wqkv^T
            pl.BlockSpec((L, 3 * D, 1), lambda b: (0, 0, 0)),      # all-layer bqkv^T
            pl.BlockSpec((L, D, D), lambda b: (0, 0, 0)),          # all-layer wo^T
            pl.BlockSpec((L, D, 1), lambda b: (0, 0, 0)),          # all-layer bo^T
            pl.BlockSpec((L, D, 1), lambda b: (0, 0, 0)),          # gamma^T
            pl.BlockSpec((L, D, 1), lambda b: (0, 0, 0)),          # beta^T
            pl.BlockSpec((D, Vpad), lambda b: (0, 0)),             # lm_w (resident)
            pl.BlockSpec((1, Vpad), lambda b: (0, 0)),             # lm_b (resident)
        ],
        out_specs=pl.BlockSpec((None, T, Vpad), lambda b: (b, 0, 0)),
        compiler_params=pltpu.CompilerParams(
            dimension_semantics=("parallel",)),  # batches independent -> 2nd TC on v7x
    )(x_t, wqkv_t, bqkv_t, wo_t, bo_t, gamma_t, beta_t, lm_w_p, lm_b_p)

    return out[:, :, :V]
    # TODO(synk): cross-entropy loss branch (label is not None) not implemented.


# ----------------------------------------------------------------------------
# Parameter init (deterministic, synthetic; fused-QKV layout) & JAX reference
# ----------------------------------------------------------------------------
def init_params(key, vocab_size, block_size, emb_dim, num_heads, num_layers):
    del num_heads  # layout is head-concatenated inside each D-wide block
    keys = jax.random.split(key, 3 + num_layers)
    wte = 0.02 * jax.random.normal(keys[0], (vocab_size, emb_dim), jnp.float32)
    wpe = 0.02 * jax.random.normal(keys[1], (block_size, emb_dim), jnp.float32)
    lm_w = 0.02 * jax.random.normal(keys[2], (emb_dim, vocab_size), jnp.float32)
    lm_b = jnp.zeros((1, vocab_size), jnp.float32)

    s = 1.0 / np.sqrt(emb_dim)
    w_qkv, b_qkv, w_o, b_o, gamma, beta = [], [], [], [], [], []
    for l in range(num_layers):
        k = jax.random.split(keys[3 + l], 4)
        w_qkv.append(s * jax.random.normal(k[0], (emb_dim, 3 * emb_dim), jnp.float32))
        b_qkv.append(0.01 * jax.random.normal(k[1], (1, 3 * emb_dim), jnp.float32))
        w_o.append(s * jax.random.normal(k[2], (emb_dim, emb_dim), jnp.float32))
        b_o.append(0.01 * jax.random.normal(k[3], (1, emb_dim), jnp.float32))
        gamma.append(jnp.ones((1, emb_dim), jnp.float32))
        beta.append(jnp.zeros((1, emb_dim), jnp.float32))
    layers = tuple(jnp.stack(t) for t in (w_qkv, b_qkv, w_o, b_o, gamma, beta))
    return wte, wpe, layers, lm_w, lm_b


def mha_forward_ref(token_idxs, params, num_heads):
    wte, wpe, (w_qkv, b_qkv, w_o, b_o, gamma, beta), lm_w, lm_b = params
    B, T = token_idxs.shape
    D = wte.shape[1]
    H, Dh = num_heads, wte.shape[1] // num_heads
    L = w_qkv.shape[0]
    tril = jnp.tril(jnp.ones((T, T), bool))
    x = wte[token_idxs] + wpe[:T][None, :, :]
    for l in range(L):
        qkv = x @ w_qkv[l] + b_qkv[l]                    # (B, T, 3D)
        q = qkv[..., :D].reshape(B, T, H, Dh)
        k = qkv[..., D:2 * D].reshape(B, T, H, Dh)
        v = qkv[..., 2 * D:].reshape(B, T, H, Dh)
        att = jnp.einsum('bqhd,bkhd->bhqk', q, k)
        att = jnp.where(tril, att, 0.0) / jnp.sqrt(jnp.float32(D))
        att = jax.nn.softmax(att, axis=-1)
        out = jnp.einsum('bhqk,bkhd->bqhd', att, v).reshape(B, T, D)
        y = out @ w_o[l] + b_o[l] + x
        mean = y.mean(-1, keepdims=True)
        var = ((y - mean) ** 2).mean(-1, keepdims=True)
        x = (y - mean) / jnp.sqrt(var + 1e-5) * gamma[l] + beta[l]
    return x @ lm_w + lm_b


# ----------------------------------------------------------------------------
if __name__ == "__main__":
    # Small, forward-consistent config (vocab '0123456789+= ' -> 13 tokens).
    VOCAB_SIZE, BLOCK_SIZE = 13, 16
    EMB_DIM, NUM_HEADS, NUM_LAYERS = 32, 4, 2
    BATCH, SEQ = 2, 8

    key = jax.random.PRNGKey(0)
    k_tok, k_par = jax.random.split(key)
    params = init_params(k_par, VOCAB_SIZE, BLOCK_SIZE, EMB_DIM, NUM_HEADS,
                         NUM_LAYERS)
    token_idxs = jax.random.randint(k_tok, (BATCH, SEQ), 0, VOCAB_SIZE,
                                    dtype=jnp.int32)

    logits = jax.block_until_ready(mha_forward(token_idxs, params, NUM_HEADS))
    ref = jax.block_until_ready(mha_forward_ref(token_idxs, params, NUM_HEADS))

    np.testing.assert_allclose(np.asarray(logits), np.asarray(ref),
                               rtol=1e-4, atol=1e-4)
    assert logits.shape == (BATCH, SEQ, VOCAB_SIZE)
    print("KERNEL_OK")
</pallas_src>

<mosaic_0001>
module attributes {stable_mosaic.version = 11 : i64} {
  func.func @_mha_kernel(%arg0: i32, %arg1: memref<1x32x8xf32, #tpu.memory_space<vmem>>, %arg2: memref<2x96x32xf32, #tpu.memory_space<vmem>>, %arg3: memref<2x96x1xf32, #tpu.memory_space<vmem>>, %arg4: memref<2x32x32xf32, #tpu.memory_space<vmem>>, %arg5: memref<2x32x1xf32, #tpu.memory_space<vmem>>, %arg6: memref<2x32x1xf32, #tpu.memory_space<vmem>>, %arg7: memref<2x32x1xf32, #tpu.memory_space<vmem>>, %arg8: memref<32x128xf32, #tpu.memory_space<vmem>>, %arg9: memref<1x128xf32, #tpu.memory_space<vmem>>, %arg10: memref<1x8x128xf32, #tpu.memory_space<vmem>>) attributes {dimension_semantics = [#tpu.dimension_semantics<parallel>], iteration_bounds = array<i64: 2>, scalar_prefetch = 0 : i64, scratch_operands = 0 : i64, tpu.core_type = #tpu.core_type<tc>, window_params = [{transform_indices = @transform_0, window_bounds = array<i64: 1, 32, 8>}, {pipeline_mode = #tpu.pipeline_mode<synchronous>, transform_indices = @transform_1, window_bounds = array<i64: 2, 96, 32>}, {pipeline_mode = #tpu.pipeline_mode<synchronous>, transform_indices = @transform_2, window_bounds = array<i64: 2, 96, 1>}, {pipeline_mode = #tpu.pipeline_mode<synchronous>, transform_indices = @transform_3, window_bounds = array<i64: 2, 32, 32>}, {pipeline_mode = #tpu.pipeline_mode<synchronous>, transform_indices = @transform_4, window_bounds = array<i64: 2, 32, 1>}, {pipeline_mode = #tpu.pipeline_mode<synchronous>, transform_indices = @transform_5, window_bounds = array<i64: 2, 32, 1>}, {pipeline_mode = #tpu.pipeline_mode<synchronous>, transform_indices = @transform_6, window_bounds = array<i64: 2, 32, 1>}, {pipeline_mode = #tpu.pipeline_mode<synchronous>, transform_indices = @transform_7, window_bounds = array<i64: 32, 128>}, {pipeline_mode = #tpu.pipeline_mode<synchronous>, transform_indices = @transform_8, window_bounds = array<i64: 1, 128>}, {transform_indices = @transform_9, window_bounds = array<i64: 1, 8, 128>}]} {
    %0 = tpu.iota {dimensions = array<i32: 0>} : vector<8x8xi32>
    %1 = tpu.iota {dimensions = array<i32: 1>} : vector<8x8xi32>
    %2 = arith.cmpi sle, %1, %0 : vector<8x8xi32>
    %3 = arith.extui %2 : vector<8x8xi1> to vector<8x8xi32>
    %4 = arith.sitofp %3 : vector<8x8xi32> to vector<8x8xf32>
    %cst = arith.constant 3.200000e+01 : f32
    %5 = math.sqrt %cst : f32
    %cst_0 = arith.constant 1.000000e+00 : f32
    %6 = arith.divf %cst_0, %5 : f32
    %7 = vector.broadcast %6 : f32 to vector<8x8xf32>
    %8 = arith.mulf %4, %7 : vector<8x8xf32>
    %c0 = arith.constant 0 : index
    %c0_1 = arith.constant 0 : index
    %c0_2 = arith.constant 0 : index
    %9 = vector.load %arg1[%c0, %c0_1, %c0_2] : memref<1x32x8xf32, #tpu.memory_space<vmem>>, vector<1x32x8xf32>
    %10 = vector.shape_cast %9 : vector<1x32x8xf32> to vector<32x8xf32>
    %c0_3 = arith.constant 0 : index
    %c0_4 = arith.constant 0 : index
    %c0_5 = arith.constant 0 : index
    %11 = vector.load %arg2[%c0_3, %c0_4, %c0_5] : memref<2x96x32xf32, #tpu.memory_space<vmem>>, vector<1x96x32xf32>
    %12 = vector.shape_cast %11 : vector<1x96x32xf32> to vector<96x32xf32>
    %cst_6 = arith.constant dense<0.000000e+00> : vector<96x8xf32>
    %13 = tpu.matmul %12, %10, %cst_6 {dimension_numbers = #tpu.dot_dimension_numbers<[1], [0], [0], [1], [0, 0, 1, 1], [], []>} : vector<96x32xf32>, vector<32x8xf32>, vector<96x8xf32> -> vector<96x8xf32>
    %c0_7 = arith.constant 0 : index
    %c0_8 = arith.constant 0 : index
    %c0_9 = arith.constant 0 : index
    %14 = vector.load %arg3[%c0_7, %c0_8, %c0_9] : memref<2x96x1xf32, #tpu.memory_space<vmem>>, vector<1x96x1xf32>
    %15 = vector.shape_cast %14 : vector<1x96x1xf32> to vector<96x1xf32>
    %16 = vector.broadcast %15 : vector<96x1xf32> to vector<96x8xf32>
    %17 = arith.addf %13, %16 : vector<96x8xf32>
    %18 = vector.shape_cast %17 : vector<96x8xf32> to vector<3x4x8x8xf32>
    %19 = vector.extract_strided_slice %18 {offsets = [0, 0, 0, 0], sizes = [1, 4, 8, 8], strides = [1, 1, 1, 1]} : vector<3x4x8x8xf32> to vector<1x4x8x8xf32>
    %20 = vector.shape_cast %19 : vector<1x4x8x8xf32> to vector<4x8x8xf32>
    %21 = tpu.transpose %20, [0, 2, 1] : vector<4x8x8xf32> -> vector<4x8x8xf32>
    %22 = vector.extract_strided_slice %18 {offsets = [1, 0, 0, 0], sizes = [1, 4, 8, 8], strides = [1, 1, 1, 1]} : vector<3x4x8x8xf32> to vector<1x4x8x8xf32>
    %23 = vector.shape_cast %22 : vector<1x4x8x8xf32> to vector<4x8x8xf32>
    %24 = tpu.transpose %23, [0, 2, 1] : vector<4x8x8xf32> -> vector<4x8x8xf32>
    %25 = vector.extract_strided_slice %18 {offsets = [2, 0, 0, 0], sizes = [1, 4, 8, 8], strides = [1, 1, 1, 1]} : vector<3x4x8x8xf32> to vector<1x4x8x8xf32>
    %26 = vector.shape_cast %25 : vector<1x4x8x8xf32> to vector<4x8x8xf32>
    %27 = tpu.transpose %26, [0, 2, 1] : vector<4x8x8xf32> -> vector<4x8x8xf32>
    "tpu.trace_start"() <{level = 10 : i32, message = "hqd,hkd->hqk"}> : () -> ()
    %cst_10 = arith.constant dense<0.000000e+00> : vector<4x8x8xf32>
    %28 = tpu.matmul %21, %24, %cst_10 {dimension_numbers = #tpu.dot_dimension_numbers<[2], [2], [1], [1], [0, 0, 0, 1, 1, 1], [0], [0]>} : vector<4x8x8xf32>, vector<4x8x8xf32>, vector<4x8x8xf32> -> vector<4x8x8xf32>
    "tpu.trace_stop"() : () -> ()
    %29 = vector.shape_cast %8 : vector<8x8xf32> to vector<1x8x8xf32>
    %30 = vector.broadcast %29 : vector<1x8x8xf32> to vector<4x8x8xf32>
    %31 = arith.mulf %28, %30 : vector<4x8x8xf32>
    %32 = math.exp %31 : vector<4x8x8xf32>
    %cst_11 = arith.constant dense<0.000000e+00> : vector<4x8xf32>
    %33 = vector.multi_reduction <add>, %32, %cst_11 [2] : vector<4x8x8xf32> to vector<4x8xf32>
    %34 = vector.shape_cast %33 : vector<4x8xf32> to vector<4x8x1xf32>
    %35 = tpu.reciprocal %34 : vector<4x8x1xf32> -> vector<4x8x1xf32>
    %36 = vector.broadcast %35 : vector<4x8x1xf32> to vector<4x8x8xf32>
    %37 = arith.mulf %32, %36 : vector<4x8x8xf32>
    "tpu.trace_start"() <{level = 10 : i32, message = "hqk,hkd->hqd"}> : () -> ()
    %cst_12 = arith.constant dense<0.000000e+00> : vector<4x8x8xf32>
    %38 = tpu.matmul %37, %27, %cst_12 {dimension_numbers = #tpu.dot_dimension_numbers<[2], [1], [1], [2], [0, 0, 0, 1, 1, 2], [0], [0]>} : vector<4x8x8xf32>, vector<4x8x8xf32>, vector<4x8x8xf32> -> vector<4x8x8xf32>
    "tpu.trace_stop"() : () -> ()
    %39 = tpu.transpose %38, [0, 2, 1] : vector<4x8x8xf32> -> vector<4x8x8xf32>
    %40 = vector.shape_cast %39 : vector<4x8x8xf32> to vector<32x8xf32>
    %c0_13 = arith.constant 0 : index
    %c0_14 = arith.constant 0 : index
    %c0_15 = arith.constant 0 : index
    %41 = vector.load %arg4[%c0_13, %c0_14, %c0_15] : memref<2x32x32xf32, #tpu.memory_space<vmem>>, vector<1x32x32xf32>
    %42 = vector.shape_cast %41 : vector<1x32x32xf32> to vector<32x32xf32>
    %cst_16 = arith.constant dense<0.000000e+00> : vector<32x8xf32>
    %43 = tpu.matmul %42, %40, %cst_16 {dimension_numbers = #tpu.dot_dimension_numbers<[1], [0], [0], [1], [0, 0, 1, 1], [], []>} : vector<32x32xf32>, vector<32x8xf32>, vector<32x8xf32> -> vector<32x8xf32>
    %c0_17 = arith.constant 0 : index
    %c0_18 = arith.constant 0 : index
    %c0_19 = arith.constant 0 : index
    %44 = vector.load %arg5[%c0_17, %c0_18, %c0_19] : memref<2x32x1xf32, #tpu.memory_space<vmem>>, vector<1x32x1xf32>
    %45 = vector.shape_cast %44 : vector<1x32x1xf32> to vector<32x1xf32>
    %46 = vector.broadcast %45 : vector<32x1xf32> to vector<32x8xf32>
    %47 = arith.addf %43, %46 : vector<32x8xf32>
    %48 = arith.addf %47, %10 : vector<32x8xf32>
    %cst_20 = arith.constant dense<0.000000e+00> : vector<8xf32>
    %49 = vector.multi_reduction <add>, %48, %cst_20 [0] : vector<32x8xf32> to vector<8xf32>
    %50 = vector.shape_cast %49 : vector<8xf32> to vector<1x8xf32>
    %cst_21 = arith.constant 3.200000e+01 : f32
    %51 = vector.broadcast %cst_21 : f32 to vector<1x8xf32>
    %52 = arith.divf %50, %51 : vector<1x8xf32>
    %53 = vector.broadcast %52 : vector<1x8xf32> to vector<32x8xf32>
    %54 = arith.subf %48, %53 : vector<32x8xf32>
    %55 = arith.mulf %54, %54 : vector<32x8xf32>
    %cst_22 = arith.constant dense<0.000000e+00> : vector<8xf32>
    %56 = vector.multi_reduction <add>, %55, %cst_22 [0] : vector<32x8xf32> to vector<8xf32>
    %57 = vector.shape_cast %56 : vector<8xf32> to vector<1x8xf32>
    %cst_23 = arith.constant 3.200000e+01 : f32
    %58 = vector.broadcast %cst_23 : f32 to vector<1x8xf32>
    %59 = arith.divf %57, %58 : vector<1x8xf32>
    %60 = vector.broadcast %52 : vector<1x8xf32> to vector<32x8xf32>
    %61 = arith.subf %48, %60 : vector<32x8xf32>
    %cst_24 = arith.constant 9.99999974E-6 : f32
    %62 = vector.broadcast %cst_24 : f32 to vector<1x8xf32>
    %63 = arith.addf %59, %62 : vector<1x8xf32>
    %64 = math.rsqrt %63 : vector<1x8xf32>
    %65 = vector.broadcast %64 : vector<1x8xf32> to vector<32x8xf32>
    %66 = arith.mulf %61, %65 : vector<32x8xf32>
    %c0_25 = arith.constant 0 : index
    %c0_26 = arith.constant 0 : index
    %c0_27 = arith.constant 0 : index
    %67 = vector.load %arg6[%c0_25, %c0_26, %c0_27] : memref<2x32x1xf32, #tpu.memory_space<vmem>>, vector<1x32x1xf32>
    %68 = vector.shape_cast %67 : vector<1x32x1xf32> to vector<32x1xf32>
    %69 = vector.broadcast %68 : vector<32x1xf32> to vector<32x8xf32>
    %70 = arith.mulf %66, %69 : vector<32x8xf32>
    %c0_28 = arith.constant 0 : index
    %c0_29 = arith.constant 0 : index
    %c0_30 = arith.constant 0 : index
    %71 = vector.load %arg7[%c0_28, %c0_29, %c0_30] : memref<2x32x1xf32, #tpu.memory_space<vmem>>, vector<1x32x1xf32>
    %72 = vector.shape_cast %71 : vector<1x32x1xf32> to vector<32x1xf32>
    %73 = vector.broadcast %72 : vector<32x1xf32> to vector<32x8xf32>
    %74 = arith.addf %70, %73 : vector<32x8xf32>
    %c1 = arith.constant 1 : index
    %c0_31 = arith.constant 0 : index
    %c0_32 = arith.constant 0 : index
    %75 = vector.load %arg2[%c1, %c0_31, %c0_32] : memref<2x96x32xf32, #tpu.memory_space<vmem>>, vector<1x96x32xf32>
    %76 = vector.shape_cast %75 : vector<1x96x32xf32> to vector<96x32xf32>
    %cst_33 = arith.constant dense<0.000000e+00> : vector<96x8xf32>
    %77 = tpu.matmul %76, %74, %cst_33 {dimension_numbers = #tpu.dot_dimension_numbers<[1], [0], [0], [1], [0, 0, 1, 1], [], []>} : vector<96x32xf32>, vector<32x8xf32>, vector<96x8xf32> -> vector<96x8xf32>
    %c1_34 = arith.constant 1 : index
    %c0_35 = arith.constant 0 : index
    %c0_36 = arith.constant 0 : index
    %78 = vector.load %arg3[%c1_34, %c0_35, %c0_36] : memref<2x96x1xf32, #tpu.memory_space<vmem>>, vector<1x96x1xf32>
    %79 = vector.shape_cast %78 : vector<1x96x1xf32> to vector<96x1xf32>
    %80 = vector.broadcast %79 : vector<96x1xf32> to vector<96x8xf32>
    %81 = arith.addf %77, %80 : vector<96x8xf32>
    %82 = vector.shape_cast %81 : vector<96x8xf32> to vector<3x4x8x8xf32>
    %83 = vector.extract_strided_slice %82 {offsets = [0, 0, 0, 0], sizes = [1, 4, 8, 8], strides = [1, 1, 1, 1]} : vector<3x4x8x8xf32> to vector<1x4x8x8xf32>
    %84 = vector.shape_cast %83 : vector<1x4x8x8xf32> to vector<4x8x8xf32>
    %85 = tpu.transpose %84, [0, 2, 1] : vector<4x8x8xf32> -> vector<4x8x8xf32>
    %86 = vector.extract_strided_slice %82 {offsets = [1, 0, 0, 0], sizes = [1, 4, 8, 8], strides = [1, 1, 1, 1]} : vector<3x4x8x8xf32> to vector<1x4x8x8xf32>
    %87 = vector.shape_cast %86 : vector<1x4x8x8xf32> to vector<4x8x8xf32>
    %88 = tpu.transpose %87, [0, 2, 1] : vector<4x8x8xf32> -> vector<4x8x8xf32>
    %89 = vector.extract_strided_slice %82 {offsets = [2, 0, 0, 0], sizes = [1, 4, 8, 8], strides = [1, 1, 1, 1]} : vector<3x4x8x8xf32> to vector<1x4x8x8xf32>
    %90 = vector.shape_cast %89 : vector<1x4x8x8xf32> to vector<4x8x8xf32>
    %91 = tpu.transpose %90, [0, 2, 1] : vector<4x8x8xf32> -> vector<4x8x8xf32>
    "tpu.trace_start"() <{level = 10 : i32, message = "hqd,hkd->hqk"}> : () -> ()
    %cst_37 = arith.constant dense<0.000000e+00> : vector<4x8x8xf32>
    %92 = tpu.matmul %85, %88, %cst_37 {dimension_numbers = #tpu.dot_dimension_numbers<[2], [2], [1], [1], [0, 0, 0, 1, 1, 1], [0], [0]>} : vector<4x8x8xf32>, vector<4x8x8xf32>, vector<4x8x8xf32> -> vector<4x8x8xf32>
    "tpu.trace_stop"() : () -> ()
    %93 = vector.shape_cast %8 : vector<8x8xf32> to vector<1x8x8xf32>
    %94 = vector.broadcast %93 : vector<1x8x8xf32> to vector<4x8x8xf32>
    %95 = arith.mulf %92, %94 : vector<4x8x8xf32>
    %96 = math.exp %95 : vector<4x8x8xf32>
    %cst_38 = arith.constant dense<0.000000e+00> : vector<4x8xf32>
    %97 = vector.multi_reduction <add>, %96, %cst_38 [2] : vector<4x8x8xf32> to vector<4x8xf32>
    %98 = vector.shape_cast %97 : vector<4x8xf32> to vector<4x8x1xf32>
    %99 = tpu.reciprocal %98 : vector<4x8x1xf32> -> vector<4x8x1xf32>
    %100 = vector.broadcast %99 : vector<4x8x1xf32> to vector<4x8x8xf32>
    %101 = arith.mulf %96, %100 : vector<4x8x8xf32>
    "tpu.trace_start"() <{level = 10 : i32, message = "hqk,hkd->hqd"}> : () -> ()
    %cst_39 = arith.constant dense<0.000000e+00> : vector<4x8x8xf32>
    %102 = tpu.matmul %101, %91, %cst_39 {dimension_numbers = #tpu.dot_dimension_numbers<[2], [1], [1], [2], [0, 0, 0, 1, 1, 2], [0], [0]>} : vector<4x8x8xf32>, vector<4x8x8xf32>, vector<4x8x8xf32> -> vector<4x8x8xf32>
    "tpu.trace_stop"() : () -> ()
    %103 = tpu.transpose %102, [0, 2, 1] : vector<4x8x8xf32> -> vector<4x8x8xf32>
    %104 = vector.shape_cast %103 : vector<4x8x8xf32> to vector<32x8xf32>
    %c1_40 = arith.constant 1 : index
    %c0_41 = arith.constant 0 : index
    %c0_42 = arith.constant 0 : index
    %105 = vector.load %arg4[%c1_40, %c0_41, %c0_42] : memref<2x32x32xf32, #tpu.memory_space<vmem>>, vector<1x32x32xf32>
    %106 = vector.shape_cast %105 : vector<1x32x32xf32> to vector<32x32xf32>
    %cst_43 = arith.constant dense<0.000000e+00> : vector<32x8xf32>
    %107 = tpu.matmul %106, %104, %cst_43 {dimension_numbers = #tpu.dot_dimension_numbers<[1], [0], [0], [1], [0, 0, 1, 1], [], []>} : vector<32x32xf32>, vector<32x8xf32>, vector<32x8xf32> -> vector<32x8xf32>
    %c1_44 = arith.constant 1 : index
    %c0_45 = arith.constant 0 : index
    %c0_46 = arith.constant 0 : index
    %108 = vector.load %arg5[%c1_44, %c0_45, %c0_46] : memref<2x32x1xf32, #tpu.memory_space<vmem>>, vector<1x32x1xf32>
    %109 = vector.shape_cast %108 : vector<1x32x1xf32> to vector<32x1xf32>
    %110 = vector.broadcast %109 : vector<32x1xf32> to vector<32x8xf32>
    %111 = arith.addf %107, %110 : vector<32x8xf32>
    %112 = arith.addf %111, %74 : vector<32x8xf32>
    %cst_47 = arith.constant dense<0.000000e+00> : vector<8xf32>
    %113 = vector.multi_reduction <add>, %112, %cst_47 [0] : vector<32x8xf32> to vector<8xf32>
    %114 = vector.shape_cast %113 : vector<8xf32> to vector<1x8xf32>
    %cst_48 = arith.constant 3.200000e+01 : f32
    %115 = vector.broadcast %cst_48 : f32 to vector<1x8xf32>
    %116 = arith.divf %114, %115 : vector<1x8xf32>
    %117 = vector.broadcast %116 : vector<1x8xf32> to vector<32x8xf32>
    %118 = arith.subf %112, %117 : vector<32x8xf32>
    %119 = arith.mulf %118, %118 : vector<32x8xf32>
    %cst_49 = arith.constant dense<0.000000e+00> : vector<8xf32>
    %120 = vector.multi_reduction <add>, %119, %cst_49 [0] : vector<32x8xf32> to vector<8xf32>
    %121 = vector.shape_cast %120 : vector<8xf32> to vector<1x8xf32>
    %cst_50 = arith.constant 3.200000e+01 : f32
    %122 = vector.broadcast %cst_50 : f32 to vector<1x8xf32>
    %123 = arith.divf %121, %122 : vector<1x8xf32>
    %124 = vector.broadcast %116 : vector<1x8xf32> to vector<32x8xf32>
    %125 = arith.subf %112, %124 : vector<32x8xf32>
    %cst_51 = arith.constant 9.99999974E-6 : f32
    %126 = vector.broadcast %cst_51 : f32 to vector<1x8xf32>
    %127 = arith.addf %123, %126 : vector<1x8xf32>
    %128 = math.rsqrt %127 : vector<1x8xf32>
    %129 = vector.broadcast %128 : vector<1x8xf32> to vector<32x8xf32>
    %130 = arith.mulf %125, %129 : vector<32x8xf32>
    %c1_52 = arith.constant 1 : index
    %c0_53 = arith.constant 0 : index
    %c0_54 = arith.constant 0 : index
    %131 = vector.load %arg6[%c1_52, %c0_53, %c0_54] : memref<2x32x1xf32, #tpu.memory_space<vmem>>, vector<1x32x1xf32>
    %132 = vector.shape_cast %131 : vector<1x32x1xf32> to vector<32x1xf32>
    %133 = vector.broadcast %132 : vector<32x1xf32> to vector<32x8xf32>
    %134 = arith.mulf %130, %133 : vector<32x8xf32>
    %c1_55 = arith.constant 1 : index
    %c0_56 = arith.constant 0 : index
    %c0_57 = arith.constant 0 : index
    %135 = vector.load %arg7[%c1_55, %c0_56, %c0_57] : memref<2x32x1xf32, #tpu.memory_space<vmem>>, vector<1x32x1xf32>
    %136 = vector.shape_cast %135 : vector<1x32x1xf32> to vector<32x1xf32>
    %137 = vector.broadcast %136 : vector<32x1xf32> to vector<32x8xf32>
    %138 = arith.addf %134, %137 : vector<32x8xf32>
    %139 = tpu.transpose %138, [1, 0] : vector<32x8xf32> -> vector<8x32xf32>
    %c0_58 = arith.constant 0 : index
    %c0_59 = arith.constant 0 : index
    %140 = vector.load %arg8[%c0_58, %c0_59] : memref<32x128xf32, #tpu.memory_space<vmem>>, vector<32x128xf32>
    %cst_60 = arith.constant dense<0.000000e+00> : vector<8x128xf32>
    %141 = tpu.matmul %139, %140, %cst_60 {dimension_numbers = #tpu.dot_dimension_numbers<[1], [0], [0], [1], [0, 0, 1, 1], [], []>} : vector<8x32xf32>, vector<32x128xf32>, vector<8x128xf32> -> vector<8x128xf32>
    %c0_61 = arith.constant 0 : index
    %c0_62 = arith.constant 0 : index
    %142 = vector.load %arg9[%c0_61, %c0_62] : memref<1x128xf32, #tpu.memory_space<vmem>>, vector<1x128xf32>
    %143 = vector.broadcast %142 : vector<1x128xf32> to vector<8x128xf32>
    %144 = arith.addf %141, %143 : vector<8x128xf32>
    %c0_63 = arith.constant 0 : index
    %c0_64 = arith.constant 0 : index
    %c0_65 = arith.constant 0 : index
    %145 = vector.load %arg10[%c0_63, %c0_64, %c0_65] : memref<1x8x128xf32, #tpu.memory_space<vmem>>, vector<1x8x128xf32>
    %146 = vector.shape_cast %145 : vector<1x8x128xf32> to vector<8x128xf32>
    %147 = vector.shape_cast %144 : vector<8x128xf32> to vector<1x8x128xf32>
    tpu.vector_store %arg10[%c0_63, %c0_64, %c0_65], %147 {strides = array<i32>} : memref<1x8x128xf32, #tpu.memory_space<vmem>>, vector<1x8x128xf32>,
    return
  }
  func.func @transform_0(%arg0: i32) -> (i32, i32, i32) {
    %c0_i32 = arith.constant 0 : i32
    %c0_i32_0 = arith.constant 0 : i32
    %c0_i32_1 = arith.constant 0 : i32
    return %arg0, %c0_i32, %c0_i32_0 : i32, i32, i32
  }
  func.func @transform_1(%arg0: i32) -> (i32, i32, i32) {
    %c0_i32 = arith.constant 0 : i32
    %c0_i32_0 = arith.constant 0 : i32
    %c0_i32_1 = arith.constant 0 : i32
    %c0_i32_2 = arith.constant 0 : i32
    return %c0_i32, %c0_i32_0, %c0_i32_1 : i32, i32, i32
  }
  func.func @transform_2(%arg0: i32) -> (i32, i32, i32) {
    %c0_i32 = arith.constant 0 : i32
    %c0_i32_0 = arith.constant 0 : i32
    %c0_i32_1 = arith.constant 0 : i32
    %c0_i32_2 = arith.constant 0 : i32
    return %c0_i32, %c0_i32_0, %c0_i32_1 : i32, i32, i32
  }
  func.func @transform_3(%arg0: i32) -> (i32, i32, i32) {
    %c0_i32 = arith.constant 0 : i32
    %c0_i32_0 = arith.constant 0 : i32
    %c0_i32_1 = arith.constant 0 : i32
    %c0_i32_2 = arith.constant 0 : i32
    return %c0_i32, %c0_i32_0, %c0_i32_1 : i32, i32, i32
  }
  func.func @transform_4(%arg0: i32) -> (i32, i32, i32) {
    %c0_i32 = arith.constant 0 : i32
    %c0_i32_0 = arith.constant 0 : i32
    %c0_i32_1 = arith.constant 0 : i32
    %c0_i32_2 = arith.constant 0 : i32
    return %c0_i32, %c0_i32_0, %c0_i32_1 : i32, i32, i32
  }
  func.func @transform_5(%arg0: i32) -> (i32, i32, i32) {
    %c0_i32 = arith.constant 0 : i32
    %c0_i32_0 = arith.constant 0 : i32
    %c0_i32_1 = arith.constant 0 : i32
    %c0_i32_2 = arith.constant 0 : i32
    return %c0_i32, %c0_i32_0, %c0_i32_1 : i32, i32, i32
  }
  func.func @transform_6(%arg0: i32) -> (i32, i32, i32) {
    %c0_i32 = arith.constant 0 : i32
    %c0_i32_0 = arith.constant 0 : i32
    %c0_i32_1 = arith.constant 0 : i32
    %c0_i32_2 = arith.constant 0 : i32
    return %c0_i32, %c0_i32_0, %c0_i32_1 : i32, i32, i32
  }
  func.func @transform_7(%arg0: i32) -> (i32, i32) {
    %c0_i32 = arith.constant 0 : i32
    %c0_i32_0 = arith.constant 0 : i32
    %c0_i32_1 = arith.constant 0 : i32
    return %c0_i32, %c0_i32_0 : i32, i32
  }
  func.func @transform_8(%arg0: i32) -> (i32, i32) {
    %c0_i32 = arith.constant 0 : i32
    %c0_i32_0 = arith.constant 0 : i32
    %c0_i32_1 = arith.constant 0 : i32
    return %c0_i32, %c0_i32_0 : i32, i32
  }
  func.func @transform_9(%arg0: i32) -> (i32, i32, i32) {
    %c0_i32 = arith.constant 0 : i32
    %c0_i32_0 = arith.constant 0 : i32
    %c0_i32_1 = arith.constant 0 : i32
    return %arg0, %c0_i32, %c0_i32_0 : i32, i32, i32
  }
}

</mosaic_0001>

<bundles_post_ra>
// kernel: tpu_custom_call.1
= control target key start
LH: loop header
LB: loop body
LE: loop exit
PB: predicated region body
PF: predicated region fallthrough
CT: control target
= control target key end

     0   :  { %14 = vsyncpa [#allocation3], 0  ;;  %s4354_s0 = inlined_call_operand.vmem [shape: f32[2,32,8], index: 0, kind: input, shape index: {}]   ;;  %s4355_s1 = inlined_call_operand.vmem [shape: f32[2,96,32], index: 1, kind: input, shape index: {}]   ;;  %s4356_s2 = inlined_call_operand.vmem [shape: f32[2,96,1], index: 2, kind: input, shape index: {}]   ;;  %s4357_s3 = inlined_call_operand.vmem [shape: f32[2,32,32], index: 3, kind: input, shape index: {}]   ;;  %s4358_s4 = inlined_call_operand.vmem [shape: f32[2,32,1], index: 4, kind: input, shape index: {}]   ;;  %s4359_s5 = inlined_call_operand.vmem [shape: f32[2,32,1], index: 5, kind: input, shape index: {}]   ;;  %s4360_s6 = inlined_call_operand.vmem [shape: f32[2,32,1], index: 6, kind: input, shape index: {}]   ;;  %s4361_s7 = inlined_call_operand.vmem [shape: f32[32,128], index: 7, kind: input, shape index: {}]   ;;  %s4362_s8 = inlined_call_operand.vmem [shape: f32[1,128], index: 8, kind: input, shape index: {}]   ;;  %s4363_s9 = inlined_call_operand.hbm [shape: f32[2,8,128], index: 9, kind: output, shape index: {}]  }
   0x1   :  { %16 = vsyncpa [#allocation3 + $0x1], 0  ;;  %s3817_s30 = smov 0   ;;  %s3819_s10 = smov 0  }
   0x2   :  { %s3821_s11 = smov 0   ;;  %s3823_s12 = smov 0  }
   0x3 LB: > { %s3838_s13 = sadd.s32 4294967295, %s3761_s12   ;;  %s3254_s14 = sadd.s32 4294967294, %s3761_s12   ;;  %s3761_s12 = sphi %s3823_s12, %s4371_s12   ;;  %s3757_s11 = sphi %s3821_s11, %s4370_s11   ;;  %s3753_s10 = sphi %s3819_s10, %s4369_s10   ;;  %s3749_s30 = sphi %s3817_s30, %s4368_s30  }
   0x4   : > { %s3842_s15 = sadd.s32 1, %s3761_s12   ;;  %s223_s16 = sadd.s32 1, %s3757_s11 }
   0x5   : > { %s220_s17 = ssub.s32 %s3761_s12, %s3842_s15  ;;  %p233_p0 = scmp.ne.s32.totalorder %s3757_s11, %s3753_s10 }
   0x6   : > { %p221_p1 = scmp.eq.s32.totalorder %s220_s17, 0  ;;  %p234_p2 = scmp.eq.s32.totalorder %s3838_s13, 1 }
   0x7   : > { %p239_p3 = scmp.ne.s32.totalorder %s3753_s10, %s3749_s30  ;;  %p240_p4 = scmp.eq.s32.totalorder %s3254_s14, 1 }
   0x8   : > { %s3853_s18 = scalar_select %p221_p1, %s3757_s11, %s223_s16  }
   0x9   : > { %p3855_p5 = por %p234_p2, %p233_p0  ;;  %p3859_p6 = por %p240_p4, %p239_p3 }
   0xa   : > { %4364 = sst [smem:[#allocation5_spill]] %s3853_s18  ;;  %p3257_p7 = scmp.ge.s32.totalorder %s3761_s12, 1 }
   0xb   : > { %p290_p8 = scmp.lt.s32.totalorder %s3761_s12, 3 }
   0xd   : > { %p291_p9 = pnand %p3257_p7, %p290_p8 }
   0xe   : > { %p326_p10 = scmp.lt.s32.totalorder (!%p291_p9), %s3838_s13, 1  ;;  %s323_s18 = sand.u32 (!%p291_p9), 1, %s3753_s10  }
   0xf   : > { %294 = sbr.rel (%p291_p9) target bundleno = 3018 (0xbca), region = 56  ;;  %s3258_s25 = sshll.u32 (!%p291_p9), %s323_s18, 3 }
  0x10   : > { %s325_s29 = scalar_lea.vmem (!%p291_p9), [#allocation2], %s3258_s25  ;;  %s3182_s22 = scalar_lea.sflag (!%p291_p9), [#allocation3], %s323_s18 }
  0x11   : > { %s3195_s14 = sshll.u32 (!%p291_p9), %s325_s29, 4  ;;  %s3766_s24 = smov (!%p291_p9), [#allocation2]   ;;  %s3196_s14 = int_to_ptr.vmem [resolvable:$true] %s3195_s14 }
  0x14   : > { %v343_v0 = vld [vmem:[%s4355_s1] sm:$0xff]  ;;  %vm427_vm0 = vcmask 261120   ;;  %v3763_v1 = vmov 0   ;;  %s327_s23 = scalar_select %p326_p10, %s3838_s13, 1  ;;  %v357_v3 = vld [vmem:[%s4356_s2 + $0x10] sm:$0xff]  ;;  %v356_v4 = vld [vmem:[%s4356_s2 + $0x8] sm:$0xff]  ;;  %v331_v59 = vlaneseq }
  0x15   : > { %3458 = vmatprep.mubr.msk.f32.mxu0 %vm427_vm0, %v343_v0  ;;  %3663 = vset.pattern.permute.xlu0 %v3763_v1  ;;  %v355_v2 = vld [vmem:[%s4356_s2] sm:$0xff]  ;;  %v358_v5 = vld [vmem:[%s4356_s2 + $0x18] sm:$0xff]  ;;  %v360_v10 = vld [vmem:[%s4356_s2 + $0x28] sm:$0xff]  ;;  %v3764_v23 = vmov 0.0   ;;  %vm3765_vm1 = vmmov 0   ;;  %vm717_vm2 = vcmask 64512  }
  0x16   : > { %3664 = vset.pattern.permute.xlu1 %v3763_v1  ;;  %369 = vperm.xlu0 %3663, %v355_v2   ;;  %s3364_s28 = sshll.u32 %s327_s23, 5  ;;  %v359_v9 = vld [vmem:[%s4356_s2 + $0x20] sm:$0xff]  ;;  %v344_v12 = vld [vmem:[%s4355_s1 + $0x8] sm:$0xff]  ;;  %v361_v13 = vld [vmem:[%s4356_s2 + $0x30] sm:$0xff]  ;;  %v332_v60 = vshrl.u32 %v331_v59, 7  ;;  %v334_v61 = vand.u32 127, %v331_v59 }
  0x17   : > { %379 = vperm.xlu1 %3664, %v357_v3   ;;  %s330_s21 = scalar_lea.vmem %s4354_s0, %s3364_s28  ;;  %v345_v14 = vld [vmem:[%s4355_s1 + $0x10] sm:$0xff]  ;;  %v362_v15 = vld [vmem:[%s4356_s2 + $0x38] sm:$0xff]  ;;  %v347_v17 = vld [vmem:[%s4355_s1 + $0x20] sm:$0xff]  ;;  %3476 = vmatprep.subr.mxu1 %v3764_v23  ;;  %s3361_s28 = sshll.u32 %s3838_s13, 7 }
  0x18   : > { %v3886_v6 = vld [vmem:[%s330_s21 + $0x18] sm:$0xff]  ;;  %v3888_v7 = vld [vmem:[%s330_s21 + $0x10] sm:$0xff]  ;;  %v3892_v8 = vld [vmem:[%s330_s21 + $0x8] sm:$0xff]  ;;  %3478 = vmatprep.mubr.msk.f32.mxu1 %vm3765_vm1, %v3764_v23  ;;  %vm335_vm3 = vcmp.le.s32.totalorder %v334_v61, %v332_v60  ;;  %s3701_s23 = scalar_lea.vmem %s3196_s14, 128  ;;  %s3705_s13 = sshll.u32 %s3766_s24, 4  ;;  %s3706_s13 = int_to_ptr.vmem [resolvable:$false] %s3705_s13 }
  0x19   : > { %3450 = vmatprep.subr.mxu0 %v3886_v6  ;;  %v3902_v11 = vld [vmem:[%s330_s21] sm:$0xff]  ;;  %v346_v16 = vld [vmem:[%s4355_s1 + $0x18] sm:$0xff]  ;;  %v348_v18 = vld [vmem:[%s4355_s1 + $0x28] sm:$0xff]  ;;  %v3261_v62 = vsel %vm335_vm3, 1.0, %v3764_v23  ;;  %s4319_s21 = scalar_lea.hbm %s4363_s9, %s3361_s28  ;;  %p3702_p11 = scmp.ne.s32.totalorder %s3196_s14, %s3701_s23 }
  0x1a   : > { %374 = vperm.xlu0 %3663, %v356_v4   ;;  %3451 = vmatpush3.msra.mxu0 %v3886_v6  ;;  %v349_v19 = vld [vmem:[%s4355_s1 + $0x30] sm:$0xff]  ;;  %v350_v20 = vld [vmem:[%s4355_s1 + $0x38] sm:$0xff]  ;;  %v351_v21 = vld [vmem:[%s4355_s1 + $0x40] sm:$0xff]  ;;  %v3985_v63 = vmul.f32 0.17677669, %v3261_v62  ;;  %s3707_s25 = scalar_lea.vmem %s3706_s13, 256  ;;  %p3708_p0 = scmp.lt.s32.totalorder %s3196_s14, %s3706_s13 }
  0x1b   : > { %384 = vperm.xlu1 %3664, %v358_v5   ;;  %3452 = vmatprep.subr.mxu0 %v3888_v7  ;;  %v352_v22 = vld [vmem:[%s4355_s1 + $0x48] sm:$0xff]  ;;  %v363_v40 = vld [vmem:[%s4356_s2 + $0x40] sm:$0xff]  ;;  %v353_v41 = vld [vmem:[%s4355_s1 + $0x50] sm:$0xff]  ;;  %p3703_p12 = pnand %p3702_p11, %p3855_p5  ;;  %p3709_p1 = scmp.lt.s32.totalorder %s3707_s25, %s3701_s23 }
  0x1c   : > { %3453 = vmatpush3.msra.mxu0 %v3888_v7  ;;  %v354_v42 = vld [vmem:[%s4355_s1 + $0x58] sm:$0xff]  ;;  %v1474_v60 = vld [vmem:[%s4357_s3] sm:$0xff]  ;;  %v1479_v61 = vld [vmem:[%s4358_s4 + $0x8] sm:$0xff] }
  0x1d   : > { %3454 = vmatprep.subr.mxu0 %v3892_v8  ;;  %v1480_v62 = vld [vmem:[%s4358_s4 + $0x10] sm:$0xff]  ;;  %p3704_p13 = pneg %p3703_p12  ;;  %p3710_p2 = por %p3709_p1, %p3708_p0 }
  0x1e   : > { %389 = vperm.xlu0 %3663, %v359_v9   ;;  %3455 = vmatpush3.msra.mxu0 %v3892_v8 }
  0x1f   : > { %394 = vperm.xlu1 %3664, %v360_v10   ;;  %3456 = vmatprep.subr.mxu0 %v3902_v11  ;;  %p3711_p3 = pnand %p3710_p2, %p3704_p13 }
  0x20   : > { %3457 = vmatpush3.msra.mxu0 %v3902_v11 }
  0x21   : > { %3459 = vmatmul.mubr.msk.f32.vlgmr.msra.gmra.mxu0 %vm427_vm0, %v344_v12 }
  0x22   : > { %399 = vperm.xlu0 %3663, %v361_v13   ;;  %3461 = vmatprep.mubr.msk.f32.mxu0 %vm427_vm0, %v345_v14 }
  0x23   : > { %404 = vperm.xlu1 %3664, %v362_v15  }
  0x25   : > { %3462 = vmatmul.mubr.msk.f32.gmra.mxu0 %vm427_vm0, %v346_v16 }
  0x26   : > { %3464 = vmatprep.mubr.msk.f32.mxu0 %vm427_vm0, %v347_v17 }
  0x29   : > { %3465 = vmatmul.mubr.msk.f32.gmra.mxu0 %vm427_vm0, %v348_v18 }
  0x2a   : > { %3467 = vmatprep.mubr.msk.f32.mxu0 %vm427_vm0, %v349_v19 }
  0x2d   : > { %3468 = vmatmul.mubr.msk.f32.gmra.mxu0 %vm427_vm0, %v350_v20 }
  0x2e   : > { %3470 = vmatprep.mubr.msk.f32.mxu0 %vm427_vm0, %v351_v21 }
  0x31   : > { %3471 = vmatmul.mubr.msk.f32.gmra.mxu0 %vm427_vm0, %v352_v22 }
  0x32   : > { %3473 = vmatprep.mubr.msk.f32.mxu0 %vm427_vm0, %v353_v41 }
  0x35   : > { %3474 = vmatmul.mubr.msk.f32.gmra.mxu0 %vm427_vm0, %v354_v42 }
  0x36   : > { %3524 = vmatprep.mubr.msk.f32.mxu0 %vm427_vm0, %v1474_v60 }
  0x91   : > { %v370_v24 = vpop.permute.xlu0 %369 }
  0x92   : > { %v380_v29 = vpop.permute.xlu1 %379 }
  0x95   : > { %v375_v25 = vpop.permute.xlu0 %374 }
  0x96   : > { %v385_v35 = vpop.permute.xlu1 %384 }
  0x99   : > { %v390_v36 = vpop.permute.xlu0 %389 }
  0x9a   : > { %v395_v43 = vpop.permute.xlu1 %394 }
  0x9d   : > { %v400_v44 = vpop.permute.xlu0 %399 }
  0x9e   : > { %v405_v46 = vpop.permute.xlu1 %404 }
  0xe1   : > { %v3460_v26 = vpop.f32.mrf.mxu0 }
  0xe2   : > { %v536_v27 = vadd.f32 %v3460_v26, %v375_v25 }
  0xe3   : > { %v530_v28 = vpop.f32.mrf.mxu0 }
  0xe4   : > { %v531_v30 = vadd.f32 %v530_v28, %v370_v24  ;;  %621 = vxpose.xlu1.b32.start.end [1/1] (short) (narrow) %v536_v27, 8 }
  0xe5   : > { %v3463_v31 = vpop.f32.mrf.mxu0 }
  0xe6   : > { %589 = vxpose.xlu0.b32.start.end [1/1] (short) (narrow) %v531_v30, 8  ;;  %v546_v38 = vadd.f32 %v3463_v31, %v385_v35  ;;  %v366_v30 = vld [vmem:[%s4356_s2 + $0x58] sm:$0xff]  ;;  %v364_v31 = vld [vmem:[%s4356_s2 + $0x48] sm:$0xff] }
  0xe7   : > { %v540_v32 = vpop.f32.mrf.mxu0 }
  0xe8   : > { %v541_v33 = vadd.f32 %v540_v32, %v380_v29  ;;  %v365_v29 = vld [vmem:[%s4356_s2 + $0x50] sm:$0xff] }
  0xe9   : > { %v3466_v34 = vpop.f32.mrf.mxu0 }
  0xea   : > { %653 = vxpose.xlu0.b32.start.end [1/1] (short) (narrow) %v541_v33, 8  ;;  %v556_v47 = vadd.f32 %v3466_v34, %v395_v43 }
  0xeb   : > { %v550_v37 = vpop.f32.mrf.mxu0 }
  0xec   : > { %v551_v39 = vadd.f32 %v550_v37, %v390_v36 }
  0xed   : > { %v3469_v45 = vpop.f32.mrf.mxu0 }
  0xee   : > { %3477 = vmatpush3.msra.mxu1 %v551_v39  ;;  %685 = vxpose.xlu0.b32.start.end [1/1] (short) (narrow) %v546_v38, 8  ;;  %v566_v53 = vadd.f32 %v3469_v45, %v405_v46 }
  0xef   : > { %3481 = vmatprep.subr.mxu1 %v3764_v23  ;;  %v560_v49 = vpop.f32.mrf.mxu0 }
  0xf0   : > { %v561_v51 = vadd.f32 %v560_v49, %v400_v44 }
  0xf1   : > { %v3980_v55 = vpop.f32.mrf.mxu0 }
  0xf3   : > { %v570_v56 = vpop.f32.mrf.mxu0 }
  0xf5   : > { %v3475_v38 = vpop.f32.mrf.mxu0 }
  0xf7   : > { %v580_v43 = vpop.f32.mrf.mxu0 }
 0x102   : > { %409 = vperm.xlu1 %3664, %v363_v40  }
 0x160   : > { %v637_v50 = vpop.trf.xlu1 }
 0x162   : > { %v605_v48 = vpop.trf.xlu0 }
 0x163   : > { %3479 = vmatmul.mubr.msk.f32.vlgmr.msra.gmra.mxu1 %vm717_vm2, %v605_v48 }
 0x164   : > { %3482 = vmatpush3.msra.mxu1 %v556_v47  ;;  %3483 = vmatprep.mubr.msk.f32.mxu1 %vm3765_vm1, %v3764_v23 }
 0x165   : > { %3486 = vmatprep.subr.mxu1 %v3764_v23 }
 0x166   : > { %v669_v52 = vpop.trf.xlu0 }
 0x167   : > { %3484 = vmatmul.mubr.msk.f32.vlgmr.msra.gmra.mxu1 %vm717_vm2, %v637_v50 }
 0x168   : > { %3487 = vmatpush3.msra.mxu1 %v561_v51  ;;  %3488 = vmatprep.mubr.msk.f32.mxu1 %vm3765_vm1, %v3764_v23 }
 0x169   : > { %3491 = vmatprep.subr.mxu1 %v3764_v23 }
 0x16a   : > { %v701_v54 = vpop.trf.xlu0 }
 0x16b   : > { %3489 = vmatmul.mubr.msk.f32.vlgmr.msra.gmra.mxu1 %vm717_vm2, %v669_v52 }
 0x16c   : > { %3492 = vmatpush3.msra.mxu1 %v566_v53  ;;  %3493 = vmatprep.mubr.msk.f32.mxu1 %vm3765_vm1, %v3764_v23 }
 0x16d   : > { %3496 = vmatprep.subr.mxu1 %v3764_v23 }
 0x16f   : > { %3494 = vmatmul.mubr.msk.f32.vlgmr.msra.gmra.mxu1 %vm717_vm2, %v701_v54 }
 0x170   : > { %3498 = vmatprep.mubr.msk.f32.mxu1 %vm3765_vm1, %v3764_v23 }
 0x17d   : > { %v410_v57 = vpop.permute.xlu1 %409 }
 0x17e   : > { %v571_v58 = vadd.f32 %v570_v56, %v410_v57 }
 0x180   : > { %3497 = vmatpush3.xpose.msk.msra.mxu1 %vm717_vm2, %v571_v58 }
 0x181   : > { %3501 = vmatprep.subr.mxu1 %v3764_v23 }
 0x223   : > { %v787_v0 = vpop.f32.mrf.mxu1 }
 0x224   : > { %v1010_v1 = vmul.f32 %v787_v0, %v3985_v63  ;;  %v1481_v0 = vld [vmem:[%s4358_s4 + $0x18] sm:$0xff] }
 0x225   : > { %v3480_v2 = vpop.f32.mrf.mxu1 }
 0x226   : > { %v1014_v3 = vmul.f32 1.442695, %v1010_v1  ;;  %v1648_v1 = vld [vmem:[%s4359_s5 + $0x10] sm:$0xff]  ;;  %v1647_v2 = vld [vmem:[%s4359_s5 + $0x8] sm:$0xff] }
 0x227   : > { %v860_v4 = vpop.f32.mrf.mxu1 }
 0x228   : > { %3665 = vpow2.f32 %v1014_v3  ;;  %v1011_v5 = vmul.f32 %v860_v4, %v3985_v63  ;;  %v1646_v3 = vld [vmem:[%s4359_s5] sm:$0xff] }
 0x229   : > { %v3485_v9 = vpop.f32.mrf.mxu1  ;;  %v1478_v4 = vld [vmem:[%s4358_s4] sm:$0xff] }
 0x22a   : > { %v1016_v10 = vmul.f32 1.442695, %v1011_v5  ;;  %v1674_v5 = vld [vmem:[%s4360_s6] sm:$0xff]  ;;  %v1649_v9 = vld [vmem:[%s4359_s5 + $0x18] sm:$0xff] }
 0x22b   : > { %v933_v12 = vpop.f32.mrf.mxu1 }
 0x22c   : > { %3667 = vpow2.f32 %v1016_v10  ;;  %v1012_v13 = vmul.f32 %v933_v12, %v3985_v63  ;;  %v3303_v10 = vld [vmem:[%s4356_s2 + $0x68] sm:$0xff]  ;;  %v1677_v12 = vld [vmem:[%s4360_s6 + $0x18] sm:$0xff] }
 0x22d   : > { %v3490_v14 = vpop.f32.mrf.mxu1 }
 0x22e   : > { %v1018_v15 = vmul.f32 1.442695, %v1012_v13  ;;  %v3305_v13 = vld [vmem:[%s4356_s2 + $0x78] sm:$0xff]  ;;  %v1676_v14 = vld [vmem:[%s4360_s6 + $0x10] sm:$0xff] }
 0x22f   : > { %v1006_v16 = vpop.f32.mrf.mxu1 }
 0x230   : > { %3669 = vpow2.f32 %v1018_v15  ;;  %v1013_v17 = vmul.f32 %v1006_v16, %v3985_v63  ;;  %v3307_v15 = vld [vmem:[%s4356_s2 + $0x88] sm:$0xff] }
 0x231   : > { %v3495_v18 = vpop.f32.mrf.mxu1  ;;  %v1675_v16 = vld [vmem:[%s4360_s6 + $0x8] sm:$0xff] }
 0x232   : > { %v1020_v19 = vmul.f32 1.442695, %v1013_v17  ;;  %v3309_v17 = vld [vmem:[%s4356_s2 + $0x98] sm:$0xff]  ;;  %v3302_v18 = vld [vmem:[%s4356_s2 + $0x60] sm:$0xff] }
 0x234   : > { %3671 = vpow2.f32 %v1020_v19  ;;  %v3304_v19 = vld [vmem:[%s4356_s2 + $0x70] sm:$0xff] }
 0x235   : > { %v3666_v20 = vpop.eup %3665 }
 0x236   : > { %v1022_v21 = vsel %vm717_vm2, %v3666_v20, 0.0 }
 0x237   : > { %1023 = vadd.xlane.f32.xlu0 %v1022_v21  ;;  %v3308_v21 = vld [vmem:[%s4356_s2 + $0x90] sm:$0xff] }
 0x239   : > { %v3668_v22 = vpop.eup %3667 }
 0x23a   : > { %v1025_v24 = vsel %vm717_vm2, %v3668_v22, 0.0 }
 0x23b   : > { %1026 = vadd.xlane.f32.xlu1 %v1025_v24 }
 0x23d   : > { %v3670_v25 = vpop.eup %3669 }
 0x23e   : > { %v1028_v26 = vsel %vm717_vm2, %v3670_v25, 0.0 }
 0x23f   : > { %1029 = vadd.xlane.f32.xlu1 %v1028_v26 }
 0x241   : > { %v3672_v27 = vpop.eup %3671 }
 0x242   : > { %v1031_v28 = vsel %vm717_vm2, %v3672_v27, 0.0 }
 0x243   : > { %1032 = vadd.xlane.f32.xlu0 %v1031_v28  ;;  %v1476_v28 = vld [vmem:[%s4357_s3 + $0x10] sm:$0xff] }
 0x250   : > { %419 = vperm.xlu1 %3664, %v365_v29   ;;  %v1477_v29 = vld [vmem:[%s4357_s3 + $0x18] sm:$0xff] }
 0x254   : > { %424 = vperm.xlu1 %3664, %v366_v30   ;;  %v3290_v30 = vld [vmem:[%s4355_s1 + $0x60] sm:$0xff] }
 0x259   : > { %414 = vperm.xlu0 %3663, %v364_v31  }
 0x2c0   : > { %v1024_v32 = vpop.xlane.xlu0 %1023 }
 0x2c1   : > { %3673 = vrcp.f32 %v1024_v32 }
 0x2c4   : > { %v1027_v33 = vpop.xlane.xlu1 %1026 }
 0x2c5   : > { %3675 = vrcp.f32 %v1027_v33 }
 0x2c8   : > { %v1030_v34 = vpop.xlane.xlu1 %1029 }
 0x2c9   : > { %3677 = vrcp.f32 %v1030_v34 }
 0x2cc   : > { %v1033_v35 = vpop.xlane.xlu0 %1032  ;;  %v420_v39 = vpop.permute.xlu1 %419 }
 0x2cd   : > { %3679 = vrcp.f32 %v1033_v35  ;;  %v581_v46 = vadd.f32 %v580_v43, %v420_v39 }
 0x2ce   : > { %v3674_v36 = vpop.eup %3673 }
 0x2cf   : > { %v1038_v37 = vmul.f32 %v3674_v36, %v3666_v20  ;;  %v3306_v20 = vld [vmem:[%s4356_s2 + $0x80] sm:$0xff] }
 0x2d0   : > { %v425_v47 = vpop.permute.xlu1 %424 }
 0x2d1   : > { %3499 = vmatmul.mubr.msk.f32.vlgmr.msra.gmra.mxu1 %vm717_vm2, %v1038_v37  ;;  %v586_v50 = vadd.f32 %v3475_v38, %v425_v47 }
 0x2d2   : > { %3503 = vmatprep.mubr.msk.f32.mxu1 %vm3765_vm1, %v3764_v23  ;;  %v3676_v41 = vpop.eup %3675 }
 0x2d3   : > { %v1039_v44 = vmul.f32 %v3676_v41, %v3668_v22 }
 0x2d4   : > { %v415_v40 = vpop.permute.xlu0 %414 }
 0x2d5   : > { %v576_v42 = vadd.f32 %v3980_v55, %v415_v40 }
 0x2d6   : > { %v3678_v45 = vpop.eup %3677 }
 0x2d7   : > { %3502 = vmatpush3.xpose.msk.msra.mxu1 %vm717_vm2, %v576_v42  ;;  %v1040_v48 = vmul.f32 %v3678_v45, %v3670_v25 }
 0x2d8   : > { %3506 = vmatprep.subr.mxu1 %v3764_v23 }
 0x2da   : > { %3504 = vmatmul.mubr.msk.f32.vlgmr.msra.gmra.mxu1 %vm717_vm2, %v1039_v44  ;;  %v3680_v49 = vpop.eup %3679 }
 0x2db   : > { %3507 = vmatpush3.xpose.msk.msra.mxu1 %vm717_vm2, %v581_v46  ;;  %3508 = vmatprep.mubr.msk.f32.mxu1 %vm3765_vm1, %v3764_v23  ;;  %v1041_v51 = vmul.f32 %v3680_v49, %v3672_v27  ;;  %v1475_v27 = vld [vmem:[%s4357_s3 + $0x8] sm:$0xff] }
 0x2dc   : > { %3511 = vmatprep.subr.mxu1 %v3764_v23 }
 0x2de   : > { %3509 = vmatmul.mubr.msk.f32.vlgmr.msra.gmra.mxu1 %vm717_vm2, %v1040_v48 }
 0x2df   : > { %3512 = vmatpush3.xpose.msk.msra.mxu1 %vm717_vm2, %v586_v50  ;;  %3513 = vmatprep.mubr.msk.f32.mxu1 %vm3765_vm1, %v3764_v23 }
 0x2e2   : > { %3514 = vmatmul.mubr.msk.f32.vlgmr.msra.gmra.mxu1 %vm717_vm2, %v1041_v51 }
 0x2e3   : > { %3538 = vmatprep.mubr.msk.f32.mxu1 %vm427_vm0, %v3290_v30 }
 0x391   : > { %v1114_v52 = vpop.f32.mrf.mxu1 }
 0x393   : > { %v3500_v53 = vpop.f32.mrf.mxu1 }
 0x39a   : > { %v1190_v54 = vpop.f32.mrf.mxu1 }
 0x39c   : > { %v3505_v55 = vpop.f32.mrf.mxu1 }
 0x39e   : > { %v1266_v56 = vpop.f32.mrf.mxu1 }
 0x39f   : > { %1410 = vxpose.xlu1.b32.start.end [1/1] (short) (narrow) %v1266_v56, 8 }
 0x3a0   : > { %v3510_v57 = vpop.f32.mrf.mxu1 }
 0x3a2   : > { %v1342_v58 = vpop.f32.mrf.mxu1 }
 0x3a3   : > { %1442 = vxpose.xlu0.b32.start.end [1/1] (short) (narrow) %v1342_v58, 8 }
 0x3a4   : > { %v3515_v59 = vpop.f32.mrf.mxu1 }
 0x3a7   : > { %1378 = vxpose.xlu0.b32.start.end [1/1] (short) (narrow) %v1190_v54, 8 }
 0x3ab   : > { %1346 = vxpose.xlu0.b32.start.end [1/1] (short) (narrow) %v1114_v52, 8 }
 0x3bd   : > { %1489 = vperm.xlu1 %3664, %v1479_v61  }
 0x3c1   : > { %1494 = vperm.xlu1 %3664, %v1480_v62  }
 0x3c5   : > { %1499 = vperm.xlu1 %3664, %v1481_v0  }
 0x3c9   : > { %1662 = vperm.xlu1 %3664, %v1648_v1  }
 0x3cd   : > { %1657 = vperm.xlu1 %3664, %v1647_v2  }
 0x3d1   : > { %1652 = vperm.xlu1 %3664, %v1646_v3  }
 0x3d4   : > { %1484 = vperm.xlu0 %3663, %v1478_v4  }
 0x3d5   : > { %1680 = vperm.xlu1 %3664, %v1674_v5  }
 0x3d8   : > { %1667 = vperm.xlu0 %3663, %v1649_v9  }
 0x3d9   : > { %1735 = vperm.xlu1 %3664, %v3303_v10  }
 0x3dc   : > { %1695 = vperm.xlu0 %3663, %v1677_v12  }
 0x3dd   : > { %1745 = vperm.xlu1 %3664, %v3305_v13  }
 0x3e0   : > { %1690 = vperm.xlu0 %3663, %v1676_v14  }
 0x3e1   : > { %1755 = vperm.xlu1 %3664, %v3307_v15  }
 0x3e4   : > { %1685 = vperm.xlu0 %3663, %v1675_v16  }
 0x3e5   : > { %1765 = vperm.xlu1 %3664, %v3309_v17  }
 0x3e8   : > { %1730 = vperm.xlu0 %3663, %v3302_v18  }
 0x3ec   : > { %1740 = vperm.xlu0 %3663, %v3304_v19  }
 0x3f0   : > { %1750 = vperm.xlu0 %3663, %v3306_v20  }
 0x3f4   : > { %1760 = vperm.xlu0 %3663, %v3308_v21  }
 0x41b   : > { %v1426_v24 = vpop.trf.xlu1 }
 0x41f   : > { %v1458_v22 = vpop.trf.xlu0 }
 0x420   : > { %3516 = vmatprep.subr.mxu0 %v1458_v22 }
 0x421   : > { %3517 = vmatpush3.msra.mxu0 %v1458_v22 }
 0x422   : > { %3518 = vmatprep.subr.mxu0 %v1426_v24 }
 0x423   : > { %v1394_v25 = vpop.trf.xlu0  ;;  %3519 = vmatpush3.msra.mxu0 %v1426_v24 }
 0x424   : > { %3520 = vmatprep.subr.mxu0 %v1394_v25 }
 0x425   : > { %3521 = vmatpush3.msra.mxu0 %v1394_v25 }
 0x427   : > { %v1362_v26 = vpop.trf.xlu0 }
 0x428   : > { %3522 = vmatprep.subr.mxu0 %v1362_v26 }
 0x429   : > { %3523 = vmatpush3.msra.mxu0 %v1362_v26 }
 0x42a   : > { %3525 = vmatmul.mubr.msk.f32.vlgmr.msra.gmra.mxu0 %vm427_vm0, %v1475_v27  ;;  %3556 = vmatprep.subr.mxu0 %v3764_v23 }
 0x42b   : > { %3527 = vmatprep.mubr.msk.f32.mxu0 %vm427_vm0, %v1476_v28 }
 0x42e   : > { %3528 = vmatmul.mubr.msk.f32.gmra.mxu0 %vm427_vm0, %v1477_v29 }
 0x42f   : > { %3558 = vmatprep.mubr.msk.f32.mxu0 %vm3765_vm1, %v3764_v23 }
 0x438   : > { %v1490_v31 = vpop.permute.xlu1 %1489 }
 0x43c   : > { %v1495_v32 = vpop.permute.xlu1 %1494 }
 0x440   : > { %v1500_v38 = vpop.permute.xlu1 %1499 }
 0x444   : > { %v1663_v22 = vpop.permute.xlu1 %1662 }
 0x448   : > { %v1658_v25 = vpop.permute.xlu1 %1657 }
 0x44f   : > { %v1485_v35 = vpop.permute.xlu0 %1484 }
 0x453   : > { %v1668_v21 = vpop.permute.xlu0 %1667 }
 0x457   : > { %v1696_v24 = vpop.permute.xlu0 %1695 }
 0x45b   : > { %v1691_v30 = vpop.permute.xlu0 %1690 }
 0x4ea   : > { %v3526_v33 = vpop.f32.mrf.mxu0 }
 0x4eb   : > { %v1586_v34 = vadd.f32 %v3526_v33, %v1490_v31 }
 0x4ec   : > { %v1580_v36 = vpop.f32.mrf.mxu0 }
 0x4ed   : > { %v1581_v37 = vadd.f32 %v1580_v36, %v1485_v35  ;;  %v1600_v40 = vadd.f32 %v1586_v34, %v3892_v8  ;;  %v1653_v34 = vpop.permute.xlu1 %1652 }
 0x4ee   : > { %v3529_v39 = vpop.f32.mrf.mxu0 }
 0x4ef   : > { %v1599_v41 = vadd.f32 %v1581_v37, %v3902_v11  ;;  %v1596_v42 = vadd.f32 %v3529_v39, %v1500_v38  ;;  %v1604_v46 = vsel %vm717_vm2, %v1600_v40, 0.0  ;;  %v1686_v39 = vpop.permute.xlu0 %1685 }
 0x4f0   : > { %v1590_v43 = vpop.f32.mrf.mxu0 }
 0x4f1   : > { %v1603_v44 = vsel %vm717_vm2, %v1599_v41, 0.0  ;;  %v1591_v45 = vadd.f32 %v1590_v43, %v1495_v32  ;;  %v1602_v47 = vadd.f32 %v1596_v42, %v3886_v6  ;;  %v3291_v43 = vld [vmem:[%s4355_s1 + $0x68] sm:$0xff] }
 0x4f2   : > { %v1605_v49 = vadd.f32 %v1604_v46, %v1603_v44  ;;  %v3292_v44 = vld [vmem:[%s4355_s1 + $0x70] sm:$0xff]  ;;  %v3294_v46 = vld [vmem:[%s4355_s1 + $0x80] sm:$0xff] }
 0x4f3   : > { %v1601_v48 = vadd.f32 %v1591_v45, %v3888_v7  ;;  %v1608_v52 = vsel %vm717_vm2, %v1602_v47, 0.0  ;;  %v3293_v45 = vld [vmem:[%s4355_s1 + $0x78] sm:$0xff] }
 0x4f5   : > { %v1606_v50 = vsel %vm717_vm2, %v1601_v48, 0.0 }
 0x4f6   : > { %v1607_v51 = vadd.f32 %v1606_v50, %v1605_v49  ;;  %v3297_v49 = vld [vmem:[%s4355_s1 + $0x98] sm:$0xff]  ;;  %v3298_v50 = vld [vmem:[%s4355_s1 + $0xa0] sm:$0xff] }
 0x4f8   : > { %v1609_v8 = vadd.f32 %v1608_v52, %v1607_v51  ;;  %v3299_v51 = vld [vmem:[%s4355_s1 + $0xa8] sm:$0xff]  ;;  %v1731_v52 = vpop.permute.xlu0 %1730 }
 0x4fa   : > { %v1610_v53 = vrot.slane %v1609_v8, 4 }
 0x4fc   : > { %v1611_v11 = vadd.f32 %v1610_v53, %v1609_v8 }
 0x4fe   : > { %v1612_v54 = vrot.slane %v1611_v11, 2 }
 0x500   : > { %v1613_v55 = vadd.f32 %v1612_v54, %v1611_v11 }
 0x502   : > { %v1614_v56 = vrot.slane %v1613_v55, 1 }
 0x504   : > { %v1615_v57 = vadd.f32 %v1614_v56, %v1613_v55  ;;  %v1741_v56 = vpop.permute.xlu0 %1740 }
 0x506   : > { %v1617_v58 = vmul.f32 0.03125, %v1615_v57 }
 0x508   : > { %v1618_v59 = vsub.f32 %v1599_v41, %v1617_v58  ;;  %v1619_v60 = vsub.f32 %v1600_v40, %v1617_v58  ;;  %v1620_v61 = vsub.f32 %v1601_v48, %v1617_v58  ;;  %v1621_v6 = vsub.f32 %v1602_v47, %v1617_v58  ;;  %v1681_v41 = vpop.permute.xlu1 %1680  ;;  %v3295_v47 = vld [vmem:[%s4355_s1 + $0x88] sm:$0xff]  ;;  %v3296_v48 = vld [vmem:[%s4355_s1 + $0x90] sm:$0xff] }
 0x50a   : > { %v1622_v62 = vmul.f32 %v1618_v59, %v1618_v59  ;;  %v1623_v7 = vmul.f32 %v1619_v60, %v1619_v60  ;;  %v1624_v0 = vmul.f32 %v1620_v61, %v1620_v61  ;;  %v1625_v1 = vmul.f32 %v1621_v6, %v1621_v6 }
 0x50c   : > { %v1626_v2 = vsel %vm717_vm2, %v1622_v62, 0.0  ;;  %v1627_v3 = vsel %vm717_vm2, %v1623_v7, 0.0  ;;  %v1629_v5 = vsel %vm717_vm2, %v1624_v0, 0.0  ;;  %v1631_v10 = vsel %vm717_vm2, %v1625_v1, 0.0  ;;  %v1736_v8 = vpop.permute.xlu1 %1735  ;;  %v3310_v1 = vld [vmem:[%s4356_s2 + $0xa0] sm:$0xff] }
 0x50d   : > { %v1628_v4 = vadd.f32 %v1627_v3, %v1626_v2  ;;  %v3300_v2 = vld [vmem:[%s4355_s1 + $0xb0] sm:$0xff]  ;;  %v3301_v3 = vld [vmem:[%s4355_s1 + $0xb8] sm:$0xff] }
 0x50f   : > { %v1630_v9 = vadd.f32 %v1629_v5, %v1628_v4 }
 0x511   : > { %v1632_v12 = vadd.f32 %v1631_v10, %v1630_v9 }
 0x513   : > { %v1633_v13 = vrot.slane %v1632_v12, 4 }
 0x515   : > { %v1634_v14 = vadd.f32 %v1633_v13, %v1632_v12 }
 0x517   : > { %v1635_v15 = vrot.slane %v1634_v14, 2 }
 0x519   : > { %v1636_v16 = vadd.f32 %v1635_v15, %v1634_v14 }
 0x51b   : > { %v1637_v17 = vrot.slane %v1636_v16, 1 }
 0x51d   : > { %v1638_v18 = vadd.f32 %v1637_v17, %v1636_v16 }
 0x51f   : > { %v1639_v19 = vmul.f32 0.03125, %v1638_v18 }
 0x521   : > { %v1640_v20 = vadd.f32 1e-05, %v1639_v19 }
 0x523   : > { %3681 = vrsqrt.f32 %v1640_v20 }
 0x530   : > { %v3682_v26 = vpop.eup %3681 }
 0x531   : > { %v1644_v27 = vmul.f32 %v3682_v26, %v1620_v61  ;;  %v1645_v28 = vmul.f32 %v3682_v26, %v1621_v6  ;;  %v1643_v29 = vmul.f32 %v3682_v26, %v1619_v60  ;;  %v1642_v33 = vmul.f32 %v3682_v26, %v1618_v59  ;;  %v1746_v61 = vpop.permute.xlu1 %1745  ;;  %v1751_v6 = vpop.permute.xlu0 %1750 }
 0x533   : > { %v1673_v31 = vmul.f32 %v1668_v21, %v1645_v28  ;;  %v1672_v32 = vmul.f32 %v1663_v22, %v1644_v27  ;;  %v1671_v36 = vmul.f32 %v1658_v25, %v1643_v29  ;;  %v1670_v38 = vmul.f32 %v1653_v34, %v1642_v33 }
 0x535   : > { %v4115_v35 = vadd.f32 %v1696_v24, %v1673_v31  ;;  %v4118_v37 = vadd.f32 %v1691_v30, %v1672_v32  ;;  %v4122_v40 = vadd.f32 %v1686_v39, %v1671_v36  ;;  %v4126_v42 = vadd.f32 %v1681_v41, %v1670_v38  ;;  %v1756_v4 = vpop.permute.xlu1 %1755  ;;  %v1761_v5 = vpop.permute.xlu0 %1760 }
 0x537   : > { %3530 = vmatprep.subr.mxu1 %v4115_v35 }
 0x538   : > { %3531 = vmatpush3.msra.mxu1 %v4115_v35 }
 0x539   : > { %3532 = vmatprep.subr.mxu1 %v4118_v37  ;;  %v1766_v10 = vpop.permute.xlu1 %1765 }
 0x53a   : > { %3533 = vmatpush3.msra.mxu1 %v4118_v37 }
 0x53b   : > { %3534 = vmatprep.subr.mxu1 %v4122_v40 }
 0x53c   : > { %3535 = vmatpush3.msra.mxu1 %v4122_v40 }
 0x53d   : > { %3536 = vmatprep.subr.mxu1 %v4126_v42 }
 0x53e   : > { %3537 = vmatpush3.msra.mxu1 %v4126_v42 }
 0x53f   : > { %3539 = vmatmul.mubr.msk.f32.vlgmr.msra.gmra.mxu1 %vm427_vm0, %v3291_v43  ;;  %3586 = vmatprep.subr.mxu1 %v3764_v23 }
 0x540   : > { %3541 = vmatprep.mubr.msk.f32.mxu1 %vm427_vm0, %v3292_v44 }
 0x543   : > { %3542 = vmatmul.mubr.msk.f32.gmra.mxu1 %vm427_vm0, %v3293_v45 }
 0x544   : > { %3544 = vmatprep.mubr.msk.f32.mxu1 %vm427_vm0, %v3294_v46 }
 0x547   : > { %3545 = vmatmul.mubr.msk.f32.gmra.mxu1 %vm427_vm0, %v3295_v47 }
 0x548   : > { %3547 = vmatprep.mubr.msk.f32.mxu1 %vm427_vm0, %v3296_v48 }
 0x54b   : > { %3548 = vmatmul.mubr.msk.f32.gmra.mxu1 %vm427_vm0, %v3297_v49  ;;  %v3313_v49 = vld [vmem:[%s4356_s2 + $0xb8] sm:$0xff] }
 0x54c   : > { %3550 = vmatprep.mubr.msk.f32.mxu1 %vm427_vm0, %v3298_v50  ;;  %v3311_v50 = vld [vmem:[%s4356_s2 + $0xa8] sm:$0xff] }
 0x54f   : > { %3551 = vmatmul.mubr.msk.f32.gmra.mxu1 %vm427_vm0, %v3299_v51 }
 0x550   : > { %3553 = vmatprep.mubr.msk.f32.mxu1 %vm427_vm0, %v3300_v2 }
 0x553   : > { %3554 = vmatmul.mubr.msk.f32.gmra.mxu1 %vm427_vm0, %v3301_v3 }
 0x554   : > { %3588 = vmatprep.mubr.msk.f32.mxu1 %vm3765_vm1, %v3764_v23 }
 0x5ff   : > { %v3540_v53 = vpop.f32.mrf.mxu1 }
 0x600   : > { %v1896_v11 = vadd.f32 %v3540_v53, %v1736_v8 }
 0x601   : > { %v1890_v54 = vpop.f32.mrf.mxu1 }
 0x602   : > { %v1891_v55 = vadd.f32 %v1890_v54, %v1731_v52  ;;  %1981 = vxpose.xlu1.b32.start.end [1/1] (short) (narrow) %v1896_v11, 8  ;;  %v3312_v11 = vld [vmem:[%s4356_s2 + $0xb0] sm:$0xff] }
 0x603   : > { %v3543_v57 = vpop.f32.mrf.mxu1 }
 0x604   : > { %1949 = vxpose.xlu0.b32.start.end [1/1] (short) (narrow) %v1891_v55, 8  ;;  %v1906_v7 = vadd.f32 %v3543_v57, %v1746_v61 }
 0x605   : > { %v1900_v58 = vpop.f32.mrf.mxu1 }
 0x606   : > { %v1901_v59 = vadd.f32 %v1900_v58, %v1741_v56 }
 0x607   : > { %v3546_v60 = vpop.f32.mrf.mxu1 }
 0x608   : > { %2013 = vxpose.xlu0.b32.start.end [1/1] (short) (narrow) %v1901_v59, 8  ;;  %v1916_v12 = vadd.f32 %v3546_v60, %v1756_v4 }
 0x609   : > { %v1910_v62 = vpop.f32.mrf.mxu1 }
 0x60a   : > { %v1911_v0 = vadd.f32 %v1910_v62, %v1751_v6 }
 0x60b   : > { %v3549_v9 = vpop.f32.mrf.mxu1 }
 0x60c   : > { %3557 = vmatpush3.msra.mxu0 %v1911_v0  ;;  %2045 = vxpose.xlu0.b32.start.end [1/1] (short) (narrow) %v1906_v7, 8  ;;  %v1926_v18 = vadd.f32 %v3549_v9, %v1766_v10 }
 0x60d   : > { %3561 = vmatprep.subr.mxu0 %v3764_v23  ;;  %v1920_v14 = vpop.f32.mrf.mxu1 }
 0x60e   : > { %v1921_v16 = vadd.f32 %v1920_v14, %v1761_v5 }
 0x60f   : > { %v3552_v20 = vpop.f32.mrf.mxu1 }
 0x611   : > { %v1930_v21 = vpop.f32.mrf.mxu1 }
 0x613   : > { %v3555_v61 = vpop.f32.mrf.mxu1 }
 0x620   : > { %1770 = vperm.xlu1 %3664, %v3310_v1   ;;  %v1940_v1 = vpop.f32.mrf.mxu1 }
 0x67e   : > { %v1997_v15 = vpop.trf.xlu1 }
 0x680   : > { %v1965_v13 = vpop.trf.xlu0 }
 0x681   : > { %3559 = vmatmul.mubr.msk.f32.vlgmr.msra.gmra.mxu0 %vm717_vm2, %v1965_v13 }
 0x682   : > { %3562 = vmatpush3.msra.mxu0 %v1916_v12  ;;  %3563 = vmatprep.mubr.msk.f32.mxu0 %vm3765_vm1, %v3764_v23 }
 0x683   : > { %3566 = vmatprep.subr.mxu0 %v3764_v23 }
 0x684   : > { %v2029_v17 = vpop.trf.xlu0 }
 0x685   : > { %3564 = vmatmul.mubr.msk.f32.vlgmr.msra.gmra.mxu0 %vm717_vm2, %v1997_v15 }
 0x686   : > { %3567 = vmatpush3.msra.mxu0 %v1921_v16  ;;  %3568 = vmatprep.mubr.msk.f32.mxu0 %vm3765_vm1, %v3764_v23 }
 0x687   : > { %3571 = vmatprep.subr.mxu0 %v3764_v23 }
 0x688   : > { %v2061_v19 = vpop.trf.xlu0 }
 0x689   : > { %3569 = vmatmul.mubr.msk.f32.vlgmr.msra.gmra.mxu0 %vm717_vm2, %v2029_v17 }
 0x68a   : > { %3572 = vmatpush3.msra.mxu0 %v1926_v18  ;;  %3573 = vmatprep.mubr.msk.f32.mxu0 %vm3765_vm1, %v3764_v23 }
 0x68b   : > { %3576 = vmatprep.subr.mxu0 %v3764_v23 }
 0x68d   : > { %3574 = vmatmul.mubr.msk.f32.vlgmr.msra.gmra.mxu0 %vm717_vm2, %v2061_v19 }
 0x68e   : > { %3578 = vmatprep.mubr.msk.f32.mxu0 %vm3765_vm1, %v3764_v23 }
 0x69b   : > { %v1771_v22 = vpop.permute.xlu1 %1770 }
 0x69c   : > { %v1931_v24 = vadd.f32 %v1930_v21, %v1771_v22  ;;  %v3343_v21 = vld [vmem:[%s4358_s4 + $0x28] sm:$0xff]  ;;  %v3344_v22 = vld [vmem:[%s4358_s4 + $0x30] sm:$0xff] }
 0x69e   : > { %3577 = vmatpush3.xpose.msk.msra.mxu0 %vm717_vm2, %v1931_v24  ;;  %v3345_v24 = vld [vmem:[%s4358_s4 + $0x38] sm:$0xff] }
 0x69f   : > { %3581 = vmatprep.subr.mxu0 %v3764_v23 }
 0x741   : > { %v2146_v25 = vpop.f32.mrf.mxu0 }
 0x742   : > { %v2369_v26 = vmul.f32 %v2146_v25, %v3985_v63  ;;  %v3351_v25 = vld [vmem:[%s4359_s5 + $0x28] sm:$0xff] }
 0x743   : > { %v3560_v27 = vpop.f32.mrf.mxu0 }
 0x744   : > { %v2373_v28 = vmul.f32 1.442695, %v2369_v26  ;;  %v3352_v26 = vld [vmem:[%s4359_s5 + $0x30] sm:$0xff]  ;;  %v3353_v27 = vld [vmem:[%s4359_s5 + $0x38] sm:$0xff] }
 0x745   : > { %v2219_v29 = vpop.f32.mrf.mxu0 }
 0x746   : > { %3683 = vpow2.f32 %v2373_v28  ;;  %v2370_v30 = vmul.f32 %v2219_v29, %v3985_v63  ;;  %v3357_v28 = vld [vmem:[%s4360_s6 + $0x38] sm:$0xff]  ;;  %v3342_v29 = vld [vmem:[%s4358_s4 + $0x20] sm:$0xff] }
 0x747   : > { %v3565_v31 = vpop.f32.mrf.mxu0 }
 0x748   : > { %v2375_v32 = vmul.f32 1.442695, %v2370_v30  ;;  %v3350_v30 = vld [vmem:[%s4359_s5 + $0x20] sm:$0xff] }
 0x749   : > { %v2292_v33 = vpop.f32.mrf.mxu0  ;;  %v3354_v31 = vld [vmem:[%s4360_s6 + $0x20] sm:$0xff] }
 0x74a   : > { %3685 = vpow2.f32 %v2375_v32  ;;  %v2371_v34 = vmul.f32 %v2292_v33, %v3985_v63  ;;  %v3355_v32 = vld [vmem:[%s4360_s6 + $0x28] sm:$0xff]  ;;  %v3356_v33 = vld [vmem:[%s4360_s6 + $0x30] sm:$0xff] }
 0x74b   : > { %v3570_v36 = vpop.f32.mrf.mxu0 }
 0x74c   : > { %v2377_v38 = vmul.f32 1.442695, %v2371_v34 }
 0x74d   : > { %v2365_v39 = vpop.f32.mrf.mxu0 }
 0x74e   : > { %3687 = vpow2.f32 %v2377_v38  ;;  %v2372_v51 = vmul.f32 %v2365_v39, %v3985_v63 }
 0x74f   : > { %v3575_v41 = vpop.f32.mrf.mxu0 }
 0x750   : > { %v2379_v52 = vmul.f32 1.442695, %v2372_v51  ;;  %v3339_v41 = vld [vmem:[%s4357_s3 + $0x28] sm:$0xff] }
 0x752   : > { %3689 = vpow2.f32 %v2379_v52 }
 0x753   : > { %v3684_v43 = vpop.eup %3683 }
 0x754   : > { %v2381_v44 = vsel %vm717_vm2, %v3684_v43, 0.0 }
 0x755   : > { %2382 = vadd.xlane.f32.xlu0 %v2381_v44  ;;  %v3341_v44 = vld [vmem:[%s4357_s3 + $0x38] sm:$0xff] }
 0x757   : > { %v3686_v45 = vpop.eup %3685 }
 0x758   : > { %v2384_v46 = vsel %vm717_vm2, %v3686_v45, 0.0 }
 0x759   : > { %2385 = vadd.xlane.f32.xlu1 %v2384_v46  ;;  %v3098_v46 = vld [vmem:[%s4361_s7 + $0x10] sm:$0xff] }
 0x75b   : > { %v3688_v47 = vpop.eup %3687 }
 0x75c   : > { %v2387_v48 = vsel %vm717_vm2, %v3688_v47, 0.0 }
 0x75d   : > { %2388 = vadd.xlane.f32.xlu0 %v2387_v48  ;;  %v3096_v48 = vld [vmem:[%s4361_s7] sm:$0xff] }
 0x75f   : > { %v3690_v8 = vpop.eup %3689 }
 0x760   : > { %v2390_v53 = vsel %vm717_vm2, %v3690_v8, 0.0 }
 0x76a   : > { %1785 = vperm.xlu1 %3664, %v3313_v49  }
 0x773   : > { %1775 = vperm.xlu0 %3663, %v3311_v50  }
 0x78e   : > { %2391 = vadd.xlane.f32.xlu1 %v2390_v53 }
 0x79f   : > { %1780 = vperm.xlu1 %3664, %v3312_v11  }
 0x7de   : > { %v2383_v54 = vpop.xlane.xlu0 %2382 }
 0x7df   : > { %3691 = vrcp.f32 %v2383_v54 }
 0x7e2   : > { %v2386_v55 = vpop.xlane.xlu1 %2385 }
 0x7e3   : > { %3693 = vrcp.f32 %v2386_v55 }
 0x7e6   : > { %v2389_v56 = vpop.xlane.xlu0 %2388  ;;  %v1786_v6 = vpop.permute.xlu1 %1785 }
 0x7e7   : > { %v1946_v7 = vadd.f32 %v3555_v61, %v1786_v6  ;;  %3695 = vrcp.f32 %v2389_v56 }
 0x7ec   : > { %v3692_v57 = vpop.eup %3691 }
 0x7ed   : > { %v2397_v58 = vmul.f32 %v3692_v57, %v3684_v43  ;;  %v3340_v43 = vld [vmem:[%s4357_s3 + $0x30] sm:$0xff] }
 0x7ee   : > { %v1776_v59 = vpop.permute.xlu0 %1775 }
 0x7ef   : > { %v1936_v63 = vadd.f32 %v3552_v20, %v1776_v59  ;;  %3579 = vmatmul.mubr.msk.f32.vlgmr.msra.gmra.mxu0 %vm717_vm2, %v2397_v58  ;;  %v3338_v20 = vld [vmem:[%s4357_s3 + $0x20] sm:$0xff] }
 0x7f0   : > { %v3694_v60 = vpop.eup %3693  ;;  %3583 = vmatprep.mubr.msk.f32.mxu0 %vm3765_vm1, %v3764_v23 }
 0x7f1   : > { %3582 = vmatpush3.xpose.msk.msra.mxu0 %vm717_vm2, %v1936_v63  ;;  %v2398_v62 = vmul.f32 %v3694_v60, %v3686_v45  ;;  %v3099_v45 = vld [vmem:[%s4361_s7 + $0x18] sm:$0xff] }
 0x7f2   : > { %3591 = vmatprep.subr.mxu0 %v3764_v23 }
 0x7f4   : > { %3584 = vmatmul.mubr.msk.f32.vlgmr.msra.gmra.mxu0 %vm717_vm2, %v2398_v62  ;;  %v3696_v3 = vpop.eup %3695 }
 0x7f5   : > { %3592 = vmatpush3.xpose.msk.msra.mxu0 %vm717_vm2, %v1946_v7  ;;  %3593 = vmatprep.mubr.msk.f32.mxu0 %vm3765_vm1, %v3764_v23  ;;  %v2399_v5 = vmul.f32 %v3696_v3, %v3688_v47  ;;  %v3097_v47 = vld [vmem:[%s4361_s7 + $0x8] sm:$0xff] }
 0x7f6   : > { %3610 = vmatprep.subr.mxu0 %v3764_v23 }
 0x817   : > { %v2392_v0 = vpop.xlane.xlu1 %2391 }
 0x818   : > { %3697 = vrcp.f32 %v2392_v0 }
 0x81b   : > { %v1781_v2 = vpop.permute.xlu1 %1780 }
 0x81c   : > { %v1941_v4 = vadd.f32 %v1940_v1, %v1781_v2 }
 0x81e   : > { %3587 = vmatpush3.xpose.msk.msra.mxu1 %vm717_vm2, %v1941_v4 }
 0x821   : > { %3589 = vmatmul.mubr.msk.f32.vlgmr.msra.gmra.mxu1 %vm717_vm2, %v2399_v5 }
 0x822   : > { %3604 = vmatprep.mubr.msk.f32.mxu1 %vm427_vm0, %v3338_v20 }
 0x825   : > { %v3698_v9 = vpop.eup %3697 }
 0x826   : > { %v2400_v10 = vmul.f32 %v3698_v9, %v3690_v8 }
 0x828   : > { %3594 = vmatmul.mubr.msk.f32.vlgmr.msra.gmra.mxu0 %vm717_vm2, %v2400_v10 }
 0x829   : > { %3618 = vmatprep.mubr.msk.f32.mxu0 %vm3765_vm1, %v3764_v23  ;;  %3611 = vmatpush3.msra.mxu0 %v3099_v45 }
 0x82a   : > { %3612 = vmatprep.subr.mxu0 %v3764_v23 }
 0x82b   : > { %3613 = vmatpush3.msra.mxu0 %v3098_v46 }
 0x82c   : > { %3614 = vmatprep.subr.mxu0 %v3764_v23 }
 0x82d   : > { %3615 = vmatpush3.msra.mxu0 %v3097_v47 }
 0x82e   : > { %3616 = vmatprep.subr.mxu0 %v3764_v23 }
 0x82f   : > { %3617 = vmatpush3.msra.mxu0 %v3096_v48 }
 0x8af   : > { %v2473_v12 = vpop.f32.mrf.mxu0 }
 0x8b1   : > { %v3580_v13 = vpop.f32.mrf.mxu0 }
 0x8b4   : > { %v2549_v14 = vpop.f32.mrf.mxu0 }
 0x8b6   : > { %v3585_v15 = vpop.f32.mrf.mxu0 }
 0x8e1   : > { %v2625_v16 = vpop.f32.mrf.mxu1 }
 0x8e2   : > { %2769 = vxpose.xlu1.b32.start.end [1/1] (short) (narrow) %v2625_v16, 8 }
 0x8e3   : > { %v3590_v17 = vpop.f32.mrf.mxu1 }
 0x8e8   : > { %v2701_v18 = vpop.f32.mrf.mxu0 }
 0x8e9   : > { %2801 = vxpose.xlu0.b32.start.end [1/1] (short) (narrow) %v2701_v18, 8 }
 0x8ea   : > { %v3595_v19 = vpop.f32.mrf.mxu0 }
 0x8ed   : > { %2737 = vxpose.xlu0.b32.start.end [1/1] (short) (narrow) %v2549_v14, 8 }
 0x8f1   : > { %2705 = vxpose.xlu0.b32.start.end [1/1] (short) (narrow) %v2473_v12, 8 }
 0x900   : > { %2850 = vperm.xlu1 %3664, %v3343_v21  }
 0x904   : > { %2855 = vperm.xlu1 %3664, %v3344_v22  }
 0x908   : > { %2860 = vperm.xlu1 %3664, %v3345_v24  }
 0x90c   : > { %3018 = vperm.xlu1 %3664, %v3351_v25  }
 0x910   : > { %3023 = vperm.xlu1 %3664, %v3352_v26  }
 0x914   : > { %3028 = vperm.xlu1 %3664, %v3353_v27  }
 0x918   : > { %3057 = vperm.xlu1 %3664, %v3357_v28  }
 0x91a   : > { %2845 = vperm.xlu0 %3663, %v3342_v29  }
 0x91e   : > { %3013 = vperm.xlu0 %3663, %v3350_v30  }
 0x922   : > { %3042 = vperm.xlu0 %3663, %v3354_v31  }
 0x926   : > { %3047 = vperm.xlu0 %3663, %v3355_v32  }
 0x92a   : > { %3052 = vperm.xlu0 %3663, %v3356_v33  }
 0x95e   : > { %v2785_v36 = vpop.trf.xlu1 }
 0x965   : > { %v2817_v34 = vpop.trf.xlu0 }
 0x966   : > { %3596 = vmatprep.subr.mxu1 %v2817_v34 }
 0x967   : > { %3597 = vmatpush3.msra.mxu1 %v2817_v34 }
 0x968   : > { %3598 = vmatprep.subr.mxu1 %v2785_v36 }
 0x969   : > { %v2753_v38 = vpop.trf.xlu0  ;;  %3599 = vmatpush3.msra.mxu1 %v2785_v36 }
 0x96a   : > { %3600 = vmatprep.subr.mxu1 %v2753_v38 }
 0x96b   : > { %3601 = vmatpush3.msra.mxu1 %v2753_v38 }
 0x96d   : > { %v2721_v39 = vpop.trf.xlu0 }
 0x96e   : > { %3602 = vmatprep.subr.mxu1 %v2721_v39 }
 0x96f   : > { %3603 = vmatpush3.msra.mxu1 %v2721_v39 }
 0x970   : > { %3605 = vmatmul.mubr.msk.f32.vlgmr.msra.gmra.mxu1 %vm427_vm0, %v3339_v41 }
 0x971   : > { %3607 = vmatprep.mubr.msk.f32.mxu1 %vm427_vm0, %v3340_v43 }
 0x974   : > { %3608 = vmatmul.mubr.msk.f32.gmra.mxu1 %vm427_vm0, %v3341_v44 }
 0x97b   : > { %v2851_v49 = vpop.permute.xlu1 %2850 }
 0x97f   : > { %v2856_v50 = vpop.permute.xlu1 %2855 }
 0x983   : > { %v2861_v54 = vpop.permute.xlu1 %2860 }
 0x987   : > { %v3019_v36 = vpop.permute.xlu1 %3018 }
 0x98b   : > { %v3024_v45 = vpop.permute.xlu1 %3023 }
 0x995   : > { %v2846_v8 = vpop.permute.xlu0 %2845 }
 0x999   : > { %v3014_v34 = vpop.permute.xlu0 %3013 }
 0x99d   : > { %v3043_v39 = vpop.permute.xlu0 %3042 }
 0xa30   : > { %v3606_v51 = vpop.f32.mrf.mxu1 }
 0xa31   : > { %v2947_v52 = vadd.f32 %v3606_v51, %v2851_v49  ;;  %v3048_v49 = vpop.permute.xlu0 %3047 }
 0xa32   : > { %v2941_v53 = vpop.f32.mrf.mxu1 }
 0xa33   : > { %v2942_v11 = vadd.f32 %v2941_v53, %v2846_v8  ;;  %v2961_v56 = vadd.f32 %v2947_v52, %v4122_v40  ;;  %v3029_v8 = vpop.permute.xlu1 %3028 }
 0xa34   : > { %v3609_v55 = vpop.f32.mrf.mxu1 }
 0xa35   : > { %v2960_v57 = vadd.f32 %v2942_v11, %v4126_v42  ;;  %v2957_v58 = vadd.f32 %v3609_v55, %v2861_v54  ;;  %v2965_v23 = vsel %vm717_vm2, %v2961_v56, 0.0  ;;  %v3053_v53 = vpop.permute.xlu0 %3052 }
 0xa36   : > { %v2951_v59 = vpop.f32.mrf.mxu1 }
 0xa37   : > { %v2964_v63 = vsel %vm717_vm2, %v2960_v57, 0.0  ;;  %v2952_v60 = vadd.f32 %v2951_v59, %v2856_v50  ;;  %v2963_v61 = vadd.f32 %v2957_v58, %v4115_v35  ;;  %v3058_v55 = vpop.permute.xlu1 %3057  ;;  %v3358_v58 = vld [vmem:[%s4362_s8] ss:$0 sm:$0xff] }
 0xa38   : > { %v2966_v62 = vadd.f32 %v2965_v23, %v2964_v63 }
 0xa39   : > { %v2962_v6 = vadd.f32 %v2952_v60, %v4118_v37  ;;  %v2969_v1 = vsel %vm717_vm2, %v2963_v61, 0.0 }
 0xa3b   : > { %v2967_v7 = vsel %vm717_vm2, %v2962_v6, 0.0 }
 0xa3c   : > { %v2968_v0 = vadd.f32 %v2967_v7, %v2966_v62 }
 0xa3e   : > { %v2970_v40 = vadd.f32 %v2969_v1, %v2968_v0 }
 0xa40   : > { %v2971_v2 = vrot.slane %v2970_v40, 4 }
 0xa42   : > { %v2972_v42 = vadd.f32 %v2971_v2, %v2970_v40 }
 0xa44   : > { %v2973_v3 = vrot.slane %v2972_v42, 2 }
 0xa46   : > { %v2974_v4 = vadd.f32 %v2973_v3, %v2972_v42 }
 0xa48   : > { %v2975_v5 = vrot.slane %v2974_v4, 1 }
 0xa4a   : > { %v2976_v9 = vadd.f32 %v2975_v5, %v2974_v4 }
 0xa4c   : > { %v2977_v10 = vmul.f32 0.03125, %v2976_v9 }
 0xa4e   : > { %v2978_v12 = vsub.f32 %v2960_v57, %v2977_v10  ;;  %v2979_v13 = vsub.f32 %v2961_v56, %v2977_v10  ;;  %v2980_v14 = vsub.f32 %v2962_v6, %v2977_v10  ;;  %v2981_v35 = vsub.f32 %v2963_v61, %v2977_v10 }
 0xa50   : > { %v2982_v15 = vmul.f32 %v2978_v12, %v2978_v12  ;;  %v2983_v37 = vmul.f32 %v2979_v13, %v2979_v13  ;;  %v2984_v16 = vmul.f32 %v2980_v14, %v2980_v14  ;;  %v2985_v17 = vmul.f32 %v2981_v35, %v2981_v35 }
 0xa52   : > { %v2986_v18 = vsel %vm717_vm2, %v2982_v15, 0.0  ;;  %v2987_v19 = vsel %vm717_vm2, %v2983_v37, 0.0  ;;  %v2989_v21 = vsel %vm717_vm2, %v2984_v16, 0.0  ;;  %v2991_v24 = vsel %vm717_vm2, %v2985_v17, 0.0 }
 0xa53   : > { %v2988_v20 = vadd.f32 %v2987_v19, %v2986_v18 }
 0xa55   : > { %v2990_v22 = vadd.f32 %v2989_v21, %v2988_v20 }
 0xa57   : > { %v2992_v25 = vadd.f32 %v2991_v24, %v2990_v22 }
 0xa59   : > { %v2993_v26 = vrot.slane %v2992_v25, 4 }
 0xa5b   : > { %v2994_v27 = vadd.f32 %v2993_v26, %v2992_v25 }
 0xa5d   : > { %v2995_v28 = vrot.slane %v2994_v27, 2 }
 0xa5f   : > { %v2996_v29 = vadd.f32 %v2995_v28, %v2994_v27 }
 0xa61   : > { %v2997_v30 = vrot.slane %v2996_v29, 1 }
 0xa63   : > { %v2998_v31 = vadd.f32 %v2997_v30, %v2996_v29 }
 0xa65   : > { %v2999_v32 = vmul.f32 0.03125, %v2998_v31 }
 0xa67   : > { %v3000_v33 = vadd.f32 1e-05, %v2999_v32 }
 0xa69   : > { %3699 = vrsqrt.f32 %v3000_v33 }
 0xa76   : > { %v3700_v38 = vpop.eup %3699 }
 0xa77   : > { %v3002_v41 = vmul.f32 %v3700_v38, %v2978_v12  ;;  %v3003_v43 = vmul.f32 %v3700_v38, %v2979_v13  ;;  %v3004_v46 = vmul.f32 %v3700_v38, %v2980_v14  ;;  %v3005_v52 = vmul.f32 %v3700_v38, %v2981_v35 }
 0xa79   : > { %v3031_v44 = vmul.f32 %v3014_v34, %v3002_v41  ;;  %v3032_v48 = vmul.f32 %v3019_v36, %v3003_v43  ;;  %v3033_v50 = vmul.f32 %v3024_v45, %v3004_v46  ;;  %v3034_v54 = vmul.f32 %v3029_v8, %v3005_v52 }
 0xa7b   : > { %v3060_v47 = vadd.f32 %v3043_v39, %v3031_v44  ;;  %v3061_v51 = vadd.f32 %v3048_v49, %v3032_v48  ;;  %v3062_v11 = vadd.f32 %v3053_v53, %v3033_v50  ;;  %v3063_v56 = vadd.f32 %v3058_v55, %v3034_v54 }
 0xa7d   : > { %3064 = vxpose.xlu0.b32.start [1/4] (short) (narrow) %v3060_v47, 8 }
 0xa81   : > { %3065 = vxpose.xlu0.b32.cont [2/4] (short) (narrow) %v3061_v51, 8 }
 0xa85   : > { %3066 = vxpose.xlu0.b32.cont [3/4] (short) (narrow) %v3062_v11, 8 }
 0xa89   : > { %3067 = vxpose.xlu0.b32.end [4/4] (short) (narrow) %v3063_v56, 8 }
 0xaf9   : > { %v3080_v57 = vpop.trf.xlu0 }
 0xafa   : > { %3619 = vmatmul.mubr.msk.f32.vlgmr.msra.gmra.mxu0 %vm427_vm0, %v3080_v57 }
 0xbba   : > { %v3176_v59 = vpop.f32.mrf.mxu0 }
 0xbbb   : > { %v3177_v63 = vadd.f32 %v3358_v58, %v3176_v59 }
 0xbbc   : > { %v3620_v60 = vpop.f32.mrf.mxu0 }
 0xbbd   : > { %3180 = vst [vmem:[%s325_s29] sm:$0xff] %v3177_v63 }
 0xbbe   : > { %3714 = shalt.err (!%p3711_p3)
}
 0xbbf   : > { %s3715_s26 = scalar_lea.hbm %s4319_s21, 128  ;;  %s3719_s28 = scalar_lea.hbm %s4363_s9, 256 }
 0xbc0   : > { %p3716_p4 = scmp.ne.s32.totalorder %s4319_s21, %s3715_s26  ;;  %p3720_p9 = scmp.lt.s32.totalorder %s4319_s21, %s4363_s9 }
 0xbc1   : > { %p3721_p10 = scmp.lt.s32.totalorder %s3719_s28, %s3715_s26 }
 0xbc2   : > { %p3717_p7 = pnand %p3716_p4, %p3855_p5 }
 0xbc3   : > { %p3722_p11 = por %p3721_p10, %p3720_p9 }
 0xbc4   : > { %p3718_p8 = pneg %p3717_p7 }
 0xbc6   : > { %p3723_p12 = pnand %p3722_p11, %p3718_p8 }
 0xbc8   : > { %3726 = shalt.err (!%p3723_p12)
}
 0xbc9   : > { %3621 = dma.vmem_to_hbm [thread:$0]  (%p3855_p5), %s3196_s14, 128, %s4319_s21, %s3182_s22  }
 0xbca PF: > { %p3627_p13 = scmp.ge.s32.totalorder %s3761_s12, 2  ;;  %s3207_s17 = sand.u32 1, %s3749_s30  }
 0xbcb   : > { %s3208_s23 = scalar_lea.sflag [#allocation3], %s3207_s17 }
 0xbcc   : > { %p3624_p0 = pnand %p3627_p13, %p3859_p6 }
 0xbce   : > { %p3625_p1 = pneg %p3624_p0 }
 0xbd0   : > { %3744 = dma.done.wait (%p3625_p1), %s3208_s23, 128  }
 0xbd1   : > { %3746 = vsyncadd (%p3625_p1), %s3208_s23, 4294967168  ;;  %s4367_s24 = sld [smem:[#allocation5_spill]]  ;;  %p19_p2 = scmp.ge.s32.totalorder %s3842_s15, 4  }
 0xbd2   : > { %s4368_s30 = smov %s3753_s10  ;;  %s4369_s10 = smov %s3757_s11 }
 0xbd3   : > { %s4371_s12 = smov %s3842_s15  ;;  %21 = sbr.rel (!%p19_p2) target bundleno = 3 (0x3), region = 97 }
 0xbd7   : > { %s4370_s11 = smov %s4367_s24 }
 0xbd8   :  { %3213 = vsyncpa [#allocation3], 1 }
 0xbd9   :  { %3215 = vsyncpa [#allocation3 + $0x1], 1 }

</bundles_post_ra>
